<compile_context>
chip_gen: v6e
topology: v6e:2x2x1
jax: 0.10.0
libtpu: 0.0.40
codegen_flags: <defaults>
</compile_context>

<pallas_src>
import math
import functools

import jax
import jax.numpy as jnp
from jax.experimental import pallas as pl
from jax.experimental.pallas import tpu as pltpu


_VMEM_LIMIT = 64 * 1024 * 1024  # explicit scoped-VMEM budget (fits v5e/v6e/v7x)


def _cparams(*semantics):
    return pltpu.CompilerParams(
        dimension_semantics=semantics, vmem_limit_bytes=_VMEM_LIMIT
    )


# --------------------------- in-kernel helpers -------------------------------

def _layernorm(x, g, b, eps=1e-5):
    mean = jnp.mean(x, axis=-1, keepdims=True)
    var = jnp.mean(jnp.square(x - mean), axis=-1, keepdims=True)
    return (x - mean) * jax.lax.rsqrt(var + eps) * g + b


def _gelu_tanh(x):
    # matches nn.GELU(approximate='tanh'); computed in f32 on the accumulator
    c = math.sqrt(2.0 / math.pi)
    return 0.5 * x * (1.0 + jnp.tanh(c * (x + 0.044715 * x * x * x)))


# ------------------------ fused LayerNorm + QKV ------------------------------

def _ln_qkv_kernel(x_ref, g_ref, b_ref, w_ref, wb_ref, q_ref, k_ref, v_ref, *, C):
    xn = _layernorm(x_ref[...], g_ref[...], b_ref[...]).astype(jnp.bfloat16)
    qkv = (
        jnp.dot(xn, w_ref[...], preferred_element_type=jnp.float32) + wb_ref[...]
    ).astype(jnp.bfloat16)
    q_ref[...] = qkv[:, 0 * C:1 * C]
    k_ref[...] = qkv[:, 1 * C:2 * C]
    v_ref[...] = qkv[:, 2 * C:3 * C]


def ln_qkv(x, g, b, w, wb, *, tm=256):
    """x: (N, C) f32 -> q, k, v each (N, C) bf16; q/k/v = LN(x) @ W + b split."""
    N, C = x.shape
    tm = min(tm, N)
    row = pl.BlockSpec((tm, C), lambda i: (i, 0))
    out_sds = jax.ShapeDtypeStruct((N, C), jnp.bfloat16)
    return pl.pallas_call(
        functools.partial(_ln_qkv_kernel, C=C),
        grid=(pl.cdiv(N, tm),),
        in_specs=[
            row,
            pl.BlockSpec((1, C), lambda i: (0, 0)),
            pl.BlockSpec((1, C), lambda i: (0, 0)),
            pl.BlockSpec((C, 3 * C), lambda i: (0, 0)),   # weight resident
            pl.BlockSpec((1, 3 * C), lambda i: (0, 0)),
        ],
        out_specs=(row, row, row),
        out_shape=(out_sds, out_sds, out_sds),
        compiler_params=_cparams("parallel"),
    )(x, g.reshape(1, C), b.reshape(1, C), w, wb.reshape(1, 3 * C))


# ----------------------------- causal attention ------------------------------

def _attn_kernel(q_ref, k_ref, v_ref, o_ref, *, heads, head_dim):
    q = q_ref[0]          # (T, heads*head_dim) bf16
    k = k_ref[0]
    v = v_ref[0]
    T = q.shape[0]
    scale = 1.0 / math.sqrt(head_dim)
    rows = jax.lax.broadcasted_iota(jnp.int32, (T, T), 0)
    cols = jax.lax.broadcasted_iota(jnp.int32, (T, T), 1)
    causal = cols <= rows
    outs = []
    for h in range(heads):
        lo = h * head_dim
        hi = lo + head_dim
        qh, kh, vh = q[:, lo:hi], k[:, lo:hi], v[:, lo:hi]
        s = jnp.dot(qh, kh.T, preferred_element_type=jnp.float32) * scale
        s = jnp.where(causal, s, -jnp.inf)
        s = s - jnp.max(s, axis=-1, keepdims=True)
        p = jnp.exp(s)
        p = p * pl.reciprocal(jnp.sum(p, axis=-1, keepdims=True), approx=True)
        outs.append(
            jnp.dot(p.astype(jnp.bfloat16), vh, preferred_element_type=jnp.float32)
        )
    o_ref[0] = jnp.concatenate(outs, axis=-1).astype(o_ref.dtype)


def causal_attention(q, k, v, *, n_head):
    """q/k/v: (B, T, C) bf16 -> (B, T, C) bf16; heads are sliced inside the kernel
    so inputs/outputs stay lane-dense in the C dimension."""
    B, T, C = q.shape
    hd = C // n_head
    heads_per_blk = n_head
    for g in range(1, n_head + 1):
        if n_head % g == 0 and (g * hd) % 128 == 0:
            heads_per_blk = g
            break
    gh = heads_per_blk * hd
    spec = pl.BlockSpec((1, T, gh), lambda bi, hi: (bi, 0, hi))
    # TODO(synk): for sequence lengths well beyond ~1-2K, replace the full (T,T)
    # score matrix with a flash-attention tiling over the kv axis.
    return pl.pallas_call(
        functools.partial(_attn_kernel, heads=heads_per_blk, head_dim=hd),
        grid=(B, n_head // heads_per_blk),
        in_specs=[spec, spec, spec],
        out_specs=spec,
        out_shape=jax.ShapeDtypeStruct((B, T, C), jnp.bfloat16),
        compiler_params=_cparams("parallel", "parallel"),
    )(q, k, v)


# --------------------- attention output projection + residual ----------------

def _proj_residual_kernel(y_ref, res_ref, w_ref, wb_ref, o_ref):
    p = jnp.dot(y_ref[...], w_ref[...], preferred_element_type=jnp.float32)
    o_ref[...] = res_ref[...] + p + wb_ref[...]


def proj_residual(y, res, w, wb, *, tm=256):
    """out = res + y @ W + b.  y: (N, C) bf16, res: (N, C) f32 -> (N, C) f32."""
    N, C = y.shape
    tm = min(tm, N)
    row = pl.BlockSpec((tm, C), lambda i: (i, 0))
    return pl.pallas_call(
        _proj_residual_kernel,
        grid=(pl.cdiv(N, tm),),
        in_specs=[
            row,
            row,
            pl.BlockSpec((C, C), lambda i: (0, 0)),
            pl.BlockSpec((1, C), lambda i: (0, 0)),
        ],
        out_specs=row,
        out_shape=jax.ShapeDtypeStruct((N, C), jnp.float32),
        compiler_params=_cparams("parallel"),
    )(y, res, w, wb.reshape(1, C))


# ----------------------- fused LayerNorm + MLP + residual --------------------

def _ln_mlp_residual_kernel(
    x_ref, g_ref, b_ref, wfc_ref, bfc_ref, wpr_ref, bpr_ref, o_ref
):
    x = x_ref[...]
    xn = _layernorm(x, g_ref[...], b_ref[...]).astype(jnp.bfloat16)
    h = jnp.dot(xn, wfc_ref[...], preferred_element_type=jnp.float32) + bfc_ref[...]
    h = _gelu_tanh(h).astype(jnp.bfloat16)      # GELU in f32 on the accumulator
    y = jnp.dot(h, wpr_ref[...], preferred_element_type=jnp.float32) + bpr_ref[...]
    o_ref[...] = x + y


def ln_mlp_residual(x, g, b, w_fc, b_fc, w_pr, b_pr, *, tm=256):
    """out = x + c_proj(gelu(c_fc(LN(x)))). x: (N, C) f32 -> (N, C) f32."""
    N, C = x.shape
    H = w_fc.shape[1]
    tm = min(tm, N)
    row = pl.BlockSpec((tm, C), lambda i: (i, 0))
    return pl.pallas_call(
        _ln_mlp_residual_kernel,
        grid=(pl.cdiv(N, tm),),
        in_specs=[
            row,
            pl.BlockSpec((1, C), lambda i: (0, 0)),
            pl.BlockSpec((1, C), lambda i: (0, 0)),
            pl.BlockSpec((C, H), lambda i: (0, 0)),   # fc weight resident
            pl.BlockSpec((1, H), lambda i: (0, 0)),
            pl.BlockSpec((H, C), lambda i: (0, 0)),   # proj weight resident
            pl.BlockSpec((1, C), lambda i: (0, 0)),
        ],
        out_specs=row,
        out_shape=jax.ShapeDtypeStruct((N, C), jnp.float32),
        compiler_params=_cparams("parallel"),
    )(
        x, g.reshape(1, C), b.reshape(1, C),
        w_fc, b_fc.reshape(1, H), w_pr, b_pr.reshape(1, C),
    )


# --------------------------- final LN + tied lm_head --------------------------

def _lnf_lmhead_kernel(x_ref, g_ref, b_ref, wte_ref, o_ref):
    xn = _layernorm(x_ref[...], g_ref[...], b_ref[...]).astype(jnp.bfloat16)
    # contract x's C against wte's C (x @ wte.T) without materializing wte.T
    o_ref[...] = jax.lax.dot_general(
        xn, wte_ref[...], (((1,), (1,)), ((), ())),
        preferred_element_type=jnp.float32,
    )


def lnf_lmhead(x, g, b, wte, *, tm=256, tv=2048):
    """x: (N, C) f32, wte: (V, C) bf16 -> logits (N, V) f32, tiled over vocab."""
    N, C = x.shape
    V = wte.shape[0]
    tm = min(tm, N)
    tv = min(tv, V)
    return pl.pallas_call(
        _lnf_lmhead_kernel,
        grid=(pl.cdiv(N, tm), pl.cdiv(V, tv)),
        in_specs=[
            pl.BlockSpec((tm, C), lambda i, j: (i, 0)),
            pl.BlockSpec((1, C), lambda i, j: (0, 0)),
            pl.BlockSpec((1, C), lambda i, j: (0, 0)),
            pl.BlockSpec((tv, C), lambda i, j: (j, 0)),
        ],
        out_specs=pl.BlockSpec((tm, tv), lambda i, j: (i, j)),
        out_shape=jax.ShapeDtypeStruct((N, V), jnp.float32),
        compiler_params=_cparams("parallel", "parallel"),
    )(x, g.reshape(1, C), b.reshape(1, C), wte)


# ------------------------------ Parameter init -------------------------------

def init_params(key, *, vocab_size, block_size, n_layers, n_head, n_embd):
    std = 0.02
    ks = iter(jax.random.split(key, 4 + 12 * n_layers))

    def normal(shape):
        w = std * jax.random.normal(next(ks), shape, dtype=jnp.float32)
        return w.astype(jnp.bfloat16)   # matmul weights stored in bf16 (MXU dtype)

    params = {
        "n_head": n_head,
        "wte": normal((vocab_size, n_embd)),   # tied with lm_head
        "wpe": normal((block_size, n_embd)),
        "lnf_g": jnp.ones((n_embd,), jnp.float32),
        "lnf_b": jnp.zeros((n_embd,), jnp.float32),
        "blocks": [],
    }
    for _ in range(n_layers):
        params["blocks"].append({
            "ln1_g": jnp.ones((n_embd,), jnp.float32),
            "ln1_b": jnp.zeros((n_embd,), jnp.float32),
            "attn_w": normal((n_embd, 3 * n_embd)),
            "attn_b": jnp.zeros((3 * n_embd,), jnp.float32),
            "proj_w": normal((n_embd, n_embd)),
            "proj_b": jnp.zeros((n_embd,), jnp.float32),
            "ln2_g": jnp.ones((n_embd,), jnp.float32),
            "ln2_b": jnp.zeros((n_embd,), jnp.float32),
            "fc_w": normal((n_embd, 4 * n_embd)),
            "fc_b": jnp.zeros((4 * n_embd,), jnp.float32),
            "mp_w": normal((4 * n_embd, n_embd)),
            "mp_b": jnp.zeros((n_embd,), jnp.float32),
        })
    return params


# ------------------------------ GPT forward ----------------------------------

def gpt_forward(params, idx, targets=None):
    B, T = idx.shape
    wte, wpe = params["wte"], params["wpe"]
    V, C = wte.shape
    n_head = params["n_head"]

    # token + position embedding (gather is glue, stays in plain JAX);
    # residual stream kept in f32.
    x = wte[idx].astype(jnp.float32) + wpe[:T].astype(jnp.float32)[None, :, :]
    x = x.reshape(B * T, C)

    for blk in params["blocks"]:
        # fused LayerNorm + QKV projection; q/k/v emitted directly as bf16,
        # no jnp.split / head transposes in XLA.
        q, k, v = ln_qkv(x, blk["ln1_g"], blk["ln1_b"], blk["attn_w"], blk["attn_b"])
        y = causal_attention(
            q.reshape(B, T, C), k.reshape(B, T, C), v.reshape(B, T, C),
            n_head=n_head,
        )
        # fused output projection + residual add
        x = proj_residual(y.reshape(B * T, C), x, blk["proj_w"], blk["proj_b"])
        # fused LayerNorm + MLP (fc -> tanh GELU -> proj) + residual add
        x = ln_mlp_residual(
            x, blk["ln2_g"], blk["ln2_b"],
            blk["fc_w"], blk["fc_b"], blk["mp_w"], blk["mp_b"],
        )

    # final LayerNorm + tied lm_head (no bias, no wte.T materialization)
    logits = lnf_lmhead(x, params["lnf_g"], params["lnf_b"], wte).reshape(B, T, V)

    loss = None
    if targets is not None:
        # TODO(synk): for training-scale vocab, fuse an online logsumexp + target
        # gather into the lm_head kernel instead of re-reading the full logits.
        lse = jax.nn.logsumexp(logits.reshape(-1, V), axis=-1)
        tgt = targets.reshape(-1)
        nll = lse - jnp.take_along_axis(
            logits.reshape(-1, V), tgt[:, None], axis=-1
        )[:, 0]
        loss = jnp.mean(nll)
    return logits, loss


# --------------------------------- main ---------------------------------------

if __name__ == "__main__":
    # small GPT2Config analogue: block_size=16, vocab=128, n_layers=2, n_head=4, n_embd=64
    VOCAB, BLOCK, LAYERS, HEADS, EMBD = 128, 16, 2, 4, 64
    B, T = 2, 8

    key = jax.random.PRNGKey(0)
    pkey, ikey, tkey = jax.random.split(key, 3)
    params = init_params(
        pkey,
        vocab_size=VOCAB,
        block_size=BLOCK,
        n_layers=LAYERS,
        n_head=HEADS,
        n_embd=EMBD,
    )
    idx = jax.random.randint(ikey, (B, T), 0, VOCAB, dtype=jnp.int32)
    targets = jax.random.randint(tkey, (B, T), 0, VOCAB, dtype=jnp.int32)

    logits, loss = jax.jit(functools.partial(gpt_forward, params))(idx, targets)
    jax.block_until_ready(logits)
    jax.block_until_ready(loss)

    assert logits.shape == (B, T, VOCAB)
    assert jnp.isfinite(loss)
    print("KERNEL_OK")
</pallas_src>

<mosaic_0001>
module attributes {stable_mosaic.version = 11 : i64} {
  func.func @_ln_qkv_kernel(%arg0: i32, %arg1: memref<16x64xf32, #tpu.memory_space<vmem>>, %arg2: memref<1x64xf32, #tpu.memory_space<vmem>>, %arg3: memref<1x64xf32, #tpu.memory_space<vmem>>, %arg4: memref<64x192xbf16, #tpu.memory_space<vmem>>, %arg5: memref<1x192xf32, #tpu.memory_space<vmem>>, %arg6: memref<16x64xbf16, #tpu.memory_space<vmem>>, %arg7: memref<16x64xbf16, #tpu.memory_space<vmem>>, %arg8: memref<16x64xbf16, #tpu.memory_space<vmem>>) attributes {dimension_semantics = [#tpu.dimension_semantics<parallel>], iteration_bounds = array<i64: 1>, scalar_prefetch = 0 : i64, scratch_operands = 0 : i64, tpu.core_type = #tpu.core_type<tc>, window_params = [{transform_indices = @transform_0, window_bounds = array<i64: 16, 64>}, {pipeline_mode = #tpu.pipeline_mode<synchronous>, transform_indices = @transform_1, window_bounds = array<i64: 1, 64>}, {pipeline_mode = #tpu.pipeline_mode<synchronous>, transform_indices = @transform_2, window_bounds = array<i64: 1, 64>}, {pipeline_mode = #tpu.pipeline_mode<synchronous>, transform_indices = @transform_3, window_bounds = array<i64: 64, 192>}, {pipeline_mode = #tpu.pipeline_mode<synchronous>, transform_indices = @transform_4, window_bounds = array<i64: 1, 192>}, {transform_indices = @transform_5, window_bounds = array<i64: 16, 64>}, {transform_indices = @transform_6, window_bounds = array<i64: 16, 64>}, {transform_indices = @transform_7, window_bounds = array<i64: 16, 64>}]} {
    %c0 = arith.constant 0 : index
    %c0_0 = arith.constant 0 : index
    %0 = vector.load %arg1[%c0, %c0_0] : memref<16x64xf32, #tpu.memory_space<vmem>>, vector<16x64xf32>
    %c0_1 = arith.constant 0 : index
    %c0_2 = arith.constant 0 : index
    %1 = vector.load %arg2[%c0_1, %c0_2] : memref<1x64xf32, #tpu.memory_space<vmem>>, vector<1x64xf32>
    %c0_3 = arith.constant 0 : index
    %c0_4 = arith.constant 0 : index
    %2 = vector.load %arg3[%c0_3, %c0_4] : memref<1x64xf32, #tpu.memory_space<vmem>>, vector<1x64xf32>
    %cst = arith.constant dense<0.000000e+00> : vector<16xf32>
    %3 = vector.multi_reduction <add>, %0, %cst [1] : vector<16x64xf32> to vector<16xf32>
    %4 = vector.shape_cast %3 : vector<16xf32> to vector<16x1xf32>
    %cst_5 = arith.constant 6.400000e+01 : f32
    %5 = vector.broadcast %cst_5 : f32 to vector<16x1xf32>
    %6 = arith.divf %4, %5 : vector<16x1xf32>
    %7 = vector.broadcast %6 : vector<16x1xf32> to vector<16x64xf32>
    %8 = arith.subf %0, %7 : vector<16x64xf32>
    %9 = arith.mulf %8, %8 : vector<16x64xf32>
    %cst_6 = arith.constant dense<0.000000e+00> : vector<16xf32>
    %10 = vector.multi_reduction <add>, %9, %cst_6 [1] : vector<16x64xf32> to vector<16xf32>
    %11 = vector.shape_cast %10 : vector<16xf32> to vector<16x1xf32>
    %cst_7 = arith.constant 6.400000e+01 : f32
    %12 = vector.broadcast %cst_7 : f32 to vector<16x1xf32>
    %13 = arith.divf %11, %12 : vector<16x1xf32>
    %14 = vector.broadcast %6 : vector<16x1xf32> to vector<16x64xf32>
    %15 = arith.subf %0, %14 : vector<16x64xf32>
    %cst_8 = arith.constant 9.99999974E-6 : f32
    %16 = vector.broadcast %cst_8 : f32 to vector<16x1xf32>
    %17 = arith.addf %13, %16 : vector<16x1xf32>
    %18 = math.rsqrt %17 : vector<16x1xf32>
    %19 = vector.broadcast %18 : vector<16x1xf32> to vector<16x64xf32>
    %20 = arith.mulf %15, %19 : vector<16x64xf32>
    %21 = vector.broadcast %1 : vector<1x64xf32> to vector<16x64xf32>
    %22 = arith.mulf %20, %21 : vector<16x64xf32>
    %23 = vector.broadcast %2 : vector<1x64xf32> to vector<16x64xf32>
    %24 = arith.addf %22, %23 : vector<16x64xf32>
    %25 = arith.truncf %24 : vector<16x64xf32> to vector<16x64xbf16>
    %c0_9 = arith.constant 0 : index
    %c0_10 = arith.constant 0 : index
    %26 = vector.load %arg4[%c0_9, %c0_10] : memref<64x192xbf16, #tpu.memory_space<vmem>>, vector<64x192xbf16>
    %cst_11 = arith.constant dense<0.000000e+00> : vector<16x192xf32>
    %27 = tpu.matmul %25, %26, %cst_11 {dimension_numbers = #tpu.dot_dimension_numbers<[1], [0], [0], [1], [0, 0, 1, 1], [], []>} : vector<16x64xbf16>, vector<64x192xbf16>, vector<16x192xf32> -> vector<16x192xf32>
    %c0_12 = arith.constant 0 : index
    %c0_13 = arith.constant 0 : index
    %28 = vector.load %arg5[%c0_12, %c0_13] : memref<1x192xf32, #tpu.memory_space<vmem>>, vector<1x192xf32>
    %29 = vector.broadcast %28 : vector<1x192xf32> to vector<16x192xf32>
    %30 = arith.addf %27, %29 : vector<16x192xf32>
    %31 = arith.truncf %30 : vector<16x192xf32> to vector<16x192xbf16>
    %32 = vector.extract_strided_slice %31 {offsets = [0, 0], sizes = [16, 64], strides = [1, 1]} : vector<16x192xbf16> to vector<16x64xbf16>
    %c0_14 = arith.constant 0 : index
    %c0_15 = arith.constant 0 : index
    %33 = vector.load %arg6[%c0_14, %c0_15] : memref<16x64xbf16, #tpu.memory_space<vmem>>, vector<16x64xbf16>
    tpu.vector_store %arg6[%c0_14, %c0_15], %32 {strides = array<i32>} : memref<16x64xbf16, #tpu.memory_space<vmem>>, vector<16x64xbf16>,
    %34 = vector.extract_strided_slice %31 {offsets = [0, 64], sizes = [16, 64], strides = [1, 1]} : vector<16x192xbf16> to vector<16x64xbf16>
    %c0_16 = arith.constant 0 : index
    %c0_17 = arith.constant 0 : index
    %35 = vector.load %arg7[%c0_16, %c0_17] : memref<16x64xbf16, #tpu.memory_space<vmem>>, vector<16x64xbf16>
    tpu.vector_store %arg7[%c0_16, %c0_17], %34 {strides = array<i32>} : memref<16x64xbf16, #tpu.memory_space<vmem>>, vector<16x64xbf16>,
    %36 = vector.extract_strided_slice %31 {offsets = [0, 128], sizes = [16, 64], strides = [1, 1]} : vector<16x192xbf16> to vector<16x64xbf16>
    %c0_18 = arith.constant 0 : index
    %c0_19 = arith.constant 0 : index
    %37 = vector.load %arg8[%c0_18, %c0_19] : memref<16x64xbf16, #tpu.memory_space<vmem>>, vector<16x64xbf16>
    tpu.vector_store %arg8[%c0_18, %c0_19], %36 {strides = array<i32>} : memref<16x64xbf16, #tpu.memory_space<vmem>>, vector<16x64xbf16>,
    return
  }
  func.func @transform_0(%arg0: i32) -> (i32, i32) {
    %c0_i32 = arith.constant 0 : i32
    %c0_i32_0 = arith.constant 0 : i32
    return %arg0, %c0_i32 : i32, i32
  }
  func.func @transform_1(%arg0: i32) -> (i32, i32) {
    %c0_i32 = arith.constant 0 : i32
    %c0_i32_0 = arith.constant 0 : i32
    %c0_i32_1 = arith.constant 0 : i32
    return %c0_i32, %c0_i32_0 : i32, i32
  }
  func.func @transform_2(%arg0: i32) -> (i32, i32) {
    %c0_i32 = arith.constant 0 : i32
    %c0_i32_0 = arith.constant 0 : i32
    %c0_i32_1 = arith.constant 0 : i32
    return %c0_i32, %c0_i32_0 : i32, i32
  }
  func.func @transform_3(%arg0: i32) -> (i32, i32) {
    %c0_i32 = arith.constant 0 : i32
    %c0_i32_0 = arith.constant 0 : i32
    %c0_i32_1 = arith.constant 0 : i32
    return %c0_i32, %c0_i32_0 : i32, i32
  }
  func.func @transform_4(%arg0: i32) -> (i32, i32) {
    %c0_i32 = arith.constant 0 : i32
    %c0_i32_0 = arith.constant 0 : i32
    %c0_i32_1 = arith.constant 0 : i32
    return %c0_i32, %c0_i32_0 : i32, i32
  }
  func.func @transform_5(%arg0: i32) -> (i32, i32) {
    %c0_i32 = arith.constant 0 : i32
    %c0_i32_0 = arith.constant 0 : i32
    return %arg0, %c0_i32 : i32, i32
  }
  func.func @transform_6(%arg0: i32) -> (i32, i32) {
    %c0_i32 = arith.constant 0 : i32
    %c0_i32_0 = arith.constant 0 : i32
    return %arg0, %c0_i32 : i32, i32
  }
  func.func @transform_7(%arg0: i32) -> (i32, i32) {
    %c0_i32 = arith.constant 0 : i32
    %c0_i32_0 = arith.constant 0 : i32
    return %arg0, %c0_i32 : i32, i32
  }
}

module attributes {stable_mosaic.version = 11 : i64} {
  func.func @_ln_mlp_residual_kernel(%arg0: i32, %arg1: memref<16x64xf32, #tpu.memory_space<vmem>>, %arg2: memref<1x64xf32, #tpu.memory_space<vmem>>, %arg3: memref<1x64xf32, #tpu.memory_space<vmem>>, %arg4: memref<64x256xbf16, #tpu.memory_space<vmem>>, %arg5: memref<1x256xf32, #tpu.memory_space<vmem>>, %arg6: memref<256x64xbf16, #tpu.memory_space<vmem>>, %arg7: memref<1x64xf32, #tpu.memory_space<vmem>>, %arg8: memref<16x64xf32, #tpu.memory_space<vmem>>) attributes {dimension_semantics = [#tpu.dimension_semantics<parallel>], iteration_bounds = array<i64: 1>, scalar_prefetch = 0 : i64, scratch_operands = 0 : i64, tpu.core_type = #tpu.core_type<tc>, window_params = [{transform_indices = @transform_0, window_bounds = array<i64: 16, 64>}, {pipeline_mode = #tpu.pipeline_mode<synchronous>, transform_indices = @transform_1, window_bounds = array<i64: 1, 64>}, {pipeline_mode = #tpu.pipeline_mode<synchronous>, transform_indices = @transform_2, window_bounds = array<i64: 1, 64>}, {pipeline_mode = #tpu.pipeline_mode<synchronous>, transform_indices = @transform_3, window_bounds = array<i64: 64, 256>}, {pipeline_mode = #tpu.pipeline_mode<synchronous>, transform_indices = @transform_4, window_bounds = array<i64: 1, 256>}, {pipeline_mode = #tpu.pipeline_mode<synchronous>, transform_indices = @transform_5, window_bounds = array<i64: 256, 64>}, {pipeline_mode = #tpu.pipeline_mode<synchronous>, transform_indices = @transform_6, window_bounds = array<i64: 1, 64>}, {transform_indices = @transform_7, window_bounds = array<i64: 16, 64>}]} {
    %c0 = arith.constant 0 : index
    %c0_0 = arith.constant 0 : index
    %0 = vector.load %arg1[%c0, %c0_0] : memref<16x64xf32, #tpu.memory_space<vmem>>, vector<16x64xf32>
    %c0_1 = arith.constant 0 : index
    %c0_2 = arith.constant 0 : index
    %1 = vector.load %arg2[%c0_1, %c0_2] : memref<1x64xf32, #tpu.memory_space<vmem>>, vector<1x64xf32>
    %c0_3 = arith.constant 0 : index
    %c0_4 = arith.constant 0 : index
    %2 = vector.load %arg3[%c0_3, %c0_4] : memref<1x64xf32, #tpu.memory_space<vmem>>, vector<1x64xf32>
    %cst = arith.constant dense<0.000000e+00> : vector<16xf32>
    %3 = vector.multi_reduction <add>, %0, %cst [1] : vector<16x64xf32> to vector<16xf32>
    %4 = vector.shape_cast %3 : vector<16xf32> to vector<16x1xf32>
    %cst_5 = arith.constant 6.400000e+01 : f32
    %5 = vector.broadcast %cst_5 : f32 to vector<16x1xf32>
    %6 = arith.divf %4, %5 : vector<16x1xf32>
    %7 = vector.broadcast %6 : vector<16x1xf32> to vector<16x64xf32>
    %8 = arith.subf %0, %7 : vector<16x64xf32>
    %9 = arith.mulf %8, %8 : vector<16x64xf32>
    %cst_6 = arith.constant dense<0.000000e+00> : vector<16xf32>
    %10 = vector.multi_reduction <add>, %9, %cst_6 [1] : vector<16x64xf32> to vector<16xf32>
    %11 = vector.shape_cast %10 : vector<16xf32> to vector<16x1xf32>
    %cst_7 = arith.constant 6.400000e+01 : f32
    %12 = vector.broadcast %cst_7 : f32 to vector<16x1xf32>
    %13 = arith.divf %11, %12 : vector<16x1xf32>
    %14 = vector.broadcast %6 : vector<16x1xf32> to vector<16x64xf32>
    %15 = arith.subf %0, %14 : vector<16x64xf32>
    %cst_8 = arith.constant 9.99999974E-6 : f32
    %16 = vector.broadcast %cst_8 : f32 to vector<16x1xf32>
    %17 = arith.addf %13, %16 : vector<16x1xf32>
    %18 = math.rsqrt %17 : vector<16x1xf32>
    %19 = vector.broadcast %18 : vector<16x1xf32> to vector<16x64xf32>
    %20 = arith.mulf %15, %19 : vector<16x64xf32>
    %21 = vector.broadcast %1 : vector<1x64xf32> to vector<16x64xf32>
    %22 = arith.mulf %20, %21 : vector<16x64xf32>
    %23 = vector.broadcast %2 : vector<1x64xf32> to vector<16x64xf32>
    %24 = arith.addf %22, %23 : vector<16x64xf32>
    %25 = arith.truncf %24 : vector<16x64xf32> to vector<16x64xbf16>
    %c0_9 = arith.constant 0 : index
    %c0_10 = arith.constant 0 : index
    %26 = vector.load %arg4[%c0_9, %c0_10] : memref<64x256xbf16, #tpu.memory_space<vmem>>, vector<64x256xbf16>
    %cst_11 = arith.constant dense<0.000000e+00> : vector<16x256xf32>
    %27 = tpu.matmul %25, %26, %cst_11 {dimension_numbers = #tpu.dot_dimension_numbers<[1], [0], [0], [1], [0, 0, 1, 1], [], []>} : vector<16x64xbf16>, vector<64x256xbf16>, vector<16x256xf32> -> vector<16x256xf32>
    %c0_12 = arith.constant 0 : index
    %c0_13 = arith.constant 0 : index
    %28 = vector.load %arg5[%c0_12, %c0_13] : memref<1x256xf32, #tpu.memory_space<vmem>>, vector<1x256xf32>
    %29 = vector.broadcast %28 : vector<1x256xf32> to vector<16x256xf32>
    %30 = arith.addf %27, %29 : vector<16x256xf32>
    %cst_14 = arith.constant 5.000000e-01 : f32
    %31 = vector.broadcast %cst_14 : f32 to vector<16x256xf32>
    %32 = arith.mulf %31, %30 : vector<16x256xf32>
    %cst_15 = arith.constant 4.471500e-02 : f32
    %33 = vector.broadcast %cst_15 : f32 to vector<16x256xf32>
    %34 = arith.mulf %33, %30 : vector<16x256xf32>
    %35 = arith.mulf %34, %30 : vector<16x256xf32>
    %36 = arith.mulf %35, %30 : vector<16x256xf32>
    %37 = arith.addf %30, %36 : vector<16x256xf32>
    %cst_16 = arith.constant 0.797884583 : f32
    %38 = vector.broadcast %cst_16 : f32 to vector<16x256xf32>
    %39 = arith.mulf %38, %37 : vector<16x256xf32>
    %40 = math.tanh %39 : vector<16x256xf32>
    %cst_17 = arith.constant 1.000000e+00 : f32
    %41 = vector.broadcast %cst_17 : f32 to vector<16x256xf32>
    %42 = arith.addf %41, %40 : vector<16x256xf32>
    %43 = arith.mulf %32, %42 : vector<16x256xf32>
    %44 = arith.truncf %43 : vector<16x256xf32> to vector<16x256xbf16>
    %c0_18 = arith.constant 0 : index
    %c0_19 = arith.constant 0 : index
    %45 = vector.load %arg6[%c0_18, %c0_19] : memref<256x64xbf16, #tpu.memory_space<vmem>>, vector<256x64xbf16>
    %cst_20 = arith.constant dense<0.000000e+00> : vector<16x64xf32>
    %46 = tpu.matmul %44, %45, %cst_20 {dimension_numbers = #tpu.dot_dimension_numbers<[1], [0], [0], [1], [0, 0, 1, 1], [], []>} : vector<16x256xbf16>, vector<256x64xbf16>, vector<16x64xf32> -> vector<16x64xf32>
    %c0_21 = arith.constant 0 : index
    %c0_22 = arith.constant 0 : index
    %47 = vector.load %arg7[%c0_21, %c0_22] : memref<1x64xf32, #tpu.memory_space<vmem>>, vector<1x64xf32>
    %48 = vector.broadcast %47 : vector<1x64xf32> to vector<16x64xf32>
    %49 = arith.addf %46, %48 : vector<16x64xf32>
    %50 = arith.addf %0, %49 : vector<16x64xf32>
    %c0_23 = arith.constant 0 : index
    %c0_24 = arith.constant 0 : index
    %51 = vector.load %arg8[%c0_23, %c0_24] : memref<16x64xf32, #tpu.memory_space<vmem>>, vector<16x64xf32>
    tpu.vector_store %arg8[%c0_23, %c0_24], %50 {strides = array<i32>} : memref<16x64xf32, #tpu.memory_space<vmem>>, vector<16x64xf32>,
    return
  }
  func.func @transform_0(%arg0: i32) -> (i32, i32) {
    %c0_i32 = arith.constant 0 : i32
    %c0_i32_0 = arith.constant 0 : i32
    return %arg0, %c0_i32 : i32, i32
  }
  func.func @transform_1(%arg0: i32) -> (i32, i32) {
    %c0_i32 = arith.constant 0 : i32
    %c0_i32_0 = arith.constant 0 : i32
    %c0_i32_1 = arith.constant 0 : i32
    return %c0_i32, %c0_i32_0 : i32, i32
  }
  func.func @transform_2(%arg0: i32) -> (i32, i32) {
    %c0_i32 = arith.constant 0 : i32
    %c0_i32_0 = arith.constant 0 : i32
    %c0_i32_1 = arith.constant 0 : i32
    return %c0_i32, %c0_i32_0 : i32, i32
  }
  func.func @transform_3(%arg0: i32) -> (i32, i32) {
    %c0_i32 = arith.constant 0 : i32
    %c0_i32_0 = arith.constant 0 : i32
    %c0_i32_1 = arith.constant 0 : i32
    return %c0_i32, %c0_i32_0 : i32, i32
  }
  func.func @transform_4(%arg0: i32) -> (i32, i32) {
    %c0_i32 = arith.constant 0 : i32
    %c0_i32_0 = arith.constant 0 : i32
    %c0_i32_1 = arith.constant 0 : i32
    return %c0_i32, %c0_i32_0 : i32, i32
  }
  func.func @transform_5(%arg0: i32) -> (i32, i32) {
    %c0_i32 = arith.constant 0 : i32
    %c0_i32_0 = arith.constant 0 : i32
    %c0_i32_1 = arith.constant 0 : i32
    return %c0_i32, %c0_i32_0 : i32, i32
  }
  func.func @transform_6(%arg0: i32) -> (i32, i32) {
    %c0_i32 = arith.constant 0 : i32
    %c0_i32_0 = arith.constant 0 : i32
    %c0_i32_1 = arith.constant 0 : i32
    return %c0_i32, %c0_i32_0 : i32, i32
  }
  func.func @transform_7(%arg0: i32) -> (i32, i32) {
    %c0_i32 = arith.constant 0 : i32
    %c0_i32_0 = arith.constant 0 : i32
    return %arg0, %c0_i32 : i32, i32
  }
}

module attributes {stable_mosaic.version = 11 : i64} {
  func.func @_proj_residual_kernel(%arg0: i32, %arg1: memref<16x64xbf16, #tpu.memory_space<vmem>>, %arg2: memref<16x64xf32, #tpu.memory_space<vmem>>, %arg3: memref<64x64xbf16, #tpu.memory_space<vmem>>, %arg4: memref<1x64xf32, #tpu.memory_space<vmem>>, %arg5: memref<16x64xf32, #tpu.memory_space<vmem>>) attributes {dimension_semantics = [#tpu.dimension_semantics<parallel>], iteration_bounds = array<i64: 1>, scalar_prefetch = 0 : i64, scratch_operands = 0 : i64, tpu.core_type = #tpu.core_type<tc>, window_params = [{transform_indices = @transform_0, window_bounds = array<i64: 16, 64>}, {transform_indices = @transform_1, window_bounds = array<i64: 16, 64>}, {pipeline_mode = #tpu.pipeline_mode<synchronous>, transform_indices = @transform_2, window_bounds = array<i64: 64, 64>}, {pipeline_mode = #tpu.pipeline_mode<synchronous>, transform_indices = @transform_3, window_bounds = array<i64: 1, 64>}, {transform_indices = @transform_4, window_bounds = array<i64: 16, 64>}]} {
    %c0 = arith.constant 0 : index
    %c0_0 = arith.constant 0 : index
    %0 = vector.load %arg1[%c0, %c0_0] : memref<16x64xbf16, #tpu.memory_space<vmem>>, vector<16x64xbf16>
    %c0_1 = arith.constant 0 : index
    %c0_2 = arith.constant 0 : index
    %1 = vector.load %arg3[%c0_1, %c0_2] : memref<64x64xbf16, #tpu.memory_space<vmem>>, vector<64x64xbf16>
    %cst = arith.constant dense<0.000000e+00> : vector<16x64xf32>
    %2 = tpu.matmul %0, %1, %cst {dimension_numbers = #tpu.dot_dimension_numbers<[1], [0], [0], [1], [0, 0, 1, 1], [], []>} : vector<16x64xbf16>, vector<64x64xbf16>, vector<16x64xf32> -> vector<16x64xf32>
    %c0_3 = arith.constant 0 : index
    %c0_4 = arith.constant 0 : index
    %3 = vector.load %arg2[%c0_3, %c0_4] : memref<16x64xf32, #tpu.memory_space<vmem>>, vector<16x64xf32>
    %4 = arith.addf %3, %2 : vector<16x64xf32>
    %c0_5 = arith.constant 0 : index
    %c0_6 = arith.constant 0 : index
    %5 = vector.load %arg4[%c0_5, %c0_6] : memref<1x64xf32, #tpu.memory_space<vmem>>, vector<1x64xf32>
    %6 = vector.broadcast %5 : vector<1x64xf32> to vector<16x64xf32>
    %7 = arith.addf %4, %6 : vector<16x64xf32>
    %c0_7 = arith.constant 0 : index
    %c0_8 = arith.constant 0 : index
    %8 = vector.load %arg5[%c0_7, %c0_8] : memref<16x64xf32, #tpu.memory_space<vmem>>, vector<16x64xf32>
    tpu.vector_store %arg5[%c0_7, %c0_8], %7 {strides = array<i32>} : memref<16x64xf32, #tpu.memory_space<vmem>>, vector<16x64xf32>,
    return
  }
  func.func @transform_0(%arg0: i32) -> (i32, i32) {
    %c0_i32 = arith.constant 0 : i32
    %c0_i32_0 = arith.constant 0 : i32
    return %arg0, %c0_i32 : i32, i32
  }
  func.func @transform_1(%arg0: i32) -> (i32, i32) {
    %c0_i32 = arith.constant 0 : i32
    %c0_i32_0 = arith.constant 0 : i32
    return %arg0, %c0_i32 : i32, i32
  }
  func.func @transform_2(%arg0: i32) -> (i32, i32) {
    %c0_i32 = arith.constant 0 : i32
    %c0_i32_0 = arith.constant 0 : i32
    %c0_i32_1 = arith.constant 0 : i32
    return %c0_i32, %c0_i32_0 : i32, i32
  }
  func.func @transform_3(%arg0: i32) -> (i32, i32) {
    %c0_i32 = arith.constant 0 : i32
    %c0_i32_0 = arith.constant 0 : i32
    %c0_i32_1 = arith.constant 0 : i32
    return %c0_i32, %c0_i32_0 : i32, i32
  }
  func.func @transform_4(%arg0: i32) -> (i32, i32) {
    %c0_i32 = arith.constant 0 : i32
    %c0_i32_0 = arith.constant 0 : i32
    return %arg0, %c0_i32 : i32, i32
  }
}

module attributes {stable_mosaic.version = 11 : i64} {
  func.func @_attn_kernel(%arg0: i32, %arg1: i32, %arg2: memref<1x8x64xbf16, #tpu.memory_space<vmem>>, %arg3: memref<1x8x64xbf16, #tpu.memory_space<vmem>>, %arg4: memref<1x8x64xbf16, #tpu.memory_space<vmem>>, %arg5: memref<1x8x64xbf16, #tpu.memory_space<vmem>>) attributes {dimension_semantics = [#tpu.dimension_semantics<parallel>, #tpu.dimension_semantics<parallel>], iteration_bounds = array<i64: 2, 1>, scalar_prefetch = 0 : i64, scratch_operands = 0 : i64, tpu.core_type = #tpu.core_type<tc>, window_params = [{transform_indices = @transform_0, window_bounds = array<i64: 1, 8, 64>}, {transform_indices = @transform_1, window_bounds = array<i64: 1, 8, 64>}, {transform_indices = @transform_2, window_bounds = array<i64: 1, 8, 64>}, {transform_indices = @transform_3, window_bounds = array<i64: 1, 8, 64>}]} {
    %c0 = arith.constant 0 : index
    %c0_0 = arith.constant 0 : index
    %c0_1 = arith.constant 0 : index
    %0 = vector.load %arg2[%c0, %c0_0, %c0_1] : memref<1x8x64xbf16, #tpu.memory_space<vmem>>, vector<1x8x64xbf16>
    %1 = vector.shape_cast %0 : vector<1x8x64xbf16> to vector<8x64xbf16>
    %c0_2 = arith.constant 0 : index
    %c0_3 = arith.constant 0 : index
    %c0_4 = arith.constant 0 : index
    %2 = vector.load %arg3[%c0_2, %c0_3, %c0_4] : memref<1x8x64xbf16, #tpu.memory_space<vmem>>, vector<1x8x64xbf16>
    %3 = vector.shape_cast %2 : vector<1x8x64xbf16> to vector<8x64xbf16>
    %c0_5 = arith.constant 0 : index
    %c0_6 = arith.constant 0 : index
    %c0_7 = arith.constant 0 : index
    %4 = vector.load %arg4[%c0_5, %c0_6, %c0_7] : memref<1x8x64xbf16, #tpu.memory_space<vmem>>, vector<1x8x64xbf16>
    %5 = vector.shape_cast %4 : vector<1x8x64xbf16> to vector<8x64xbf16>
    %6 = tpu.iota {dimensions = array<i32: 0>} : vector<8x8xi32>
    %7 = tpu.iota {dimensions = array<i32: 1>} : vector<8x8xi32>
    %8 = arith.cmpi sle, %7, %6 : vector<8x8xi32>
    %9 = vector.extract_strided_slice %1 {offsets = [0, 0], sizes = [8, 16], strides = [1, 1]} : vector<8x64xbf16> to vector<8x16xbf16>
    %10 = vector.extract_strided_slice %3 {offsets = [0, 0], sizes = [8, 16], strides = [1, 1]} : vector<8x64xbf16> to vector<8x16xbf16>
    %11 = vector.extract_strided_slice %5 {offsets = [0, 0], sizes = [8, 16], strides = [1, 1]} : vector<8x64xbf16> to vector<8x16xbf16>
    %12 = tpu.transpose %10, [1, 0] : vector<8x16xbf16> -> vector<16x8xbf16>
    %cst = arith.constant dense<0.000000e+00> : vector<8x8xf32>
    %13 = tpu.matmul %9, %12, %cst {dimension_numbers = #tpu.dot_dimension_numbers<[1], [0], [0], [1], [0, 0, 1, 1], [], []>} : vector<8x16xbf16>, vector<16x8xbf16>, vector<8x8xf32> -> vector<8x8xf32>
    %cst_8 = arith.constant 2.500000e-01 : f32
    %14 = vector.broadcast %cst_8 : f32 to vector<8x8xf32>
    %15 = arith.mulf %13, %14 : vector<8x8xf32>
    %cst_9 = arith.constant 0xFF800000 : f32
    %16 = vector.broadcast %cst_9 : f32 to vector<8x8xf32>
    %17 = arith.select %8, %15, %16 : vector<8x8xi1>, vector<8x8xf32>
    %cst_10 = arith.constant dense<0xFF800000> : vector<8xf32>
    %18 = vector.multi_reduction <maximumf>, %17, %cst_10 [1] : vector<8x8xf32> to vector<8xf32>
    %19 = vector.shape_cast %18 : vector<8xf32> to vector<8x1xf32>
    %20 = vector.broadcast %19 : vector<8x1xf32> to vector<8x8xf32>
    %21 = arith.subf %17, %20 : vector<8x8xf32>
    %22 = math.exp %21 : vector<8x8xf32>
    %cst_11 = arith.constant dense<0.000000e+00> : vector<8xf32>
    %23 = vector.multi_reduction <add>, %22, %cst_11 [1] : vector<8x8xf32> to vector<8xf32>
    %24 = vector.shape_cast %23 : vector<8xf32> to vector<8x1xf32>
    %25 = tpu.reciprocal %24 {approx = true} : vector<8x1xf32> -> vector<8x1xf32>
    %26 = vector.broadcast %25 : vector<8x1xf32> to vector<8x8xf32>
    %27 = arith.mulf %22, %26 : vector<8x8xf32>
    %28 = arith.truncf %27 : vector<8x8xf32> to vector<8x8xbf16>
    %cst_12 = arith.constant dense<0.000000e+00> : vector<8x16xf32>
    %29 = tpu.matmul %28, %11, %cst_12 {dimension_numbers = #tpu.dot_dimension_numbers<[1], [0], [0], [1], [0, 0, 1, 1], [], []>} : vector<8x8xbf16>, vector<8x16xbf16>, vector<8x16xf32> -> vector<8x16xf32>
    %30 = vector.extract_strided_slice %1 {offsets = [0, 16], sizes = [8, 16], strides = [1, 1]} : vector<8x64xbf16> to vector<8x16xbf16>
    %31 = vector.extract_strided_slice %3 {offsets = [0, 16], sizes = [8, 16], strides = [1, 1]} : vector<8x64xbf16> to vector<8x16xbf16>
    %32 = vector.extract_strided_slice %5 {offsets = [0, 16], sizes = [8, 16], strides = [1, 1]} : vector<8x64xbf16> to vector<8x16xbf16>
    %33 = tpu.transpose %31, [1, 0] : vector<8x16xbf16> -> vector<16x8xbf16>
    %cst_13 = arith.constant dense<0.000000e+00> : vector<8x8xf32>
    %34 = tpu.matmul %30, %33, %cst_13 {dimension_numbers = #tpu.dot_dimension_numbers<[1], [0], [0], [1], [0, 0, 1, 1], [], []>} : vector<8x16xbf16>, vector<16x8xbf16>, vector<8x8xf32> -> vector<8x8xf32>
    %cst_14 = arith.constant 2.500000e-01 : f32
    %35 = vector.broadcast %cst_14 : f32 to vector<8x8xf32>
    %36 = arith.mulf %34, %35 : vector<8x8xf32>
    %cst_15 = arith.constant 0xFF800000 : f32
    %37 = vector.broadcast %cst_15 : f32 to vector<8x8xf32>
    %38 = arith.select %8, %36, %37 : vector<8x8xi1>, vector<8x8xf32>
    %cst_16 = arith.constant dense<0xFF800000> : vector<8xf32>
    %39 = vector.multi_reduction <maximumf>, %38, %cst_16 [1] : vector<8x8xf32> to vector<8xf32>
    %40 = vector.shape_cast %39 : vector<8xf32> to vector<8x1xf32>
    %41 = vector.broadcast %40 : vector<8x1xf32> to vector<8x8xf32>
    %42 = arith.subf %38, %41 : vector<8x8xf32>
    %43 = math.exp %42 : vector<8x8xf32>
    %cst_17 = arith.constant dense<0.000000e+00> : vector<8xf32>
    %44 = vector.multi_reduction <add>, %43, %cst_17 [1] : vector<8x8xf32> to vector<8xf32>
    %45 = vector.shape_cast %44 : vector<8xf32> to vector<8x1xf32>
    %46 = tpu.reciprocal %45 {approx = true} : vector<8x1xf32> -> vector<8x1xf32>
    %47 = vector.broadcast %46 : vector<8x1xf32> to vector<8x8xf32>
    %48 = arith.mulf %43, %47 : vector<8x8xf32>
    %49 = arith.truncf %48 : vector<8x8xf32> to vector<8x8xbf16>
    %cst_18 = arith.constant dense<0.000000e+00> : vector<8x16xf32>
    %50 = tpu.matmul %49, %32, %cst_18 {dimension_numbers = #tpu.dot_dimension_numbers<[1], [0], [0], [1], [0, 0, 1, 1], [], []>} : vector<8x8xbf16>, vector<8x16xbf16>, vector<8x16xf32> -> vector<8x16xf32>
    %51 = vector.extract_strided_slice %1 {offsets = [0, 32], sizes = [8, 16], strides = [1, 1]} : vector<8x64xbf16> to vector<8x16xbf16>
    %52 = vector.extract_strided_slice %3 {offsets = [0, 32], sizes = [8, 16], strides = [1, 1]} : vector<8x64xbf16> to vector<8x16xbf16>
    %53 = vector.extract_strided_slice %5 {offsets = [0, 32], sizes = [8, 16], strides = [1, 1]} : vector<8x64xbf16> to vector<8x16xbf16>
    %54 = tpu.transpose %52, [1, 0] : vector<8x16xbf16> -> vector<16x8xbf16>
    %cst_19 = arith.constant dense<0.000000e+00> : vector<8x8xf32>
    %55 = tpu.matmul %51, %54, %cst_19 {dimension_numbers = #tpu.dot_dimension_numbers<[1], [0], [0], [1], [0, 0, 1, 1], [], []>} : vector<8x16xbf16>, vector<16x8xbf16>, vector<8x8xf32> -> vector<8x8xf32>
    %cst_20 = arith.constant 2.500000e-01 : f32
    %56 = vector.broadcast %cst_20 : f32 to vector<8x8xf32>
    %57 = arith.mulf %55, %56 : vector<8x8xf32>
    %cst_21 = arith.constant 0xFF800000 : f32
    %58 = vector.broadcast %cst_21 : f32 to vector<8x8xf32>
    %59 = arith.select %8, %57, %58 : vector<8x8xi1>, vector<8x8xf32>
    %cst_22 = arith.constant dense<0xFF800000> : vector<8xf32>
    %60 = vector.multi_reduction <maximumf>, %59, %cst_22 [1] : vector<8x8xf32> to vector<8xf32>
    %61 = vector.shape_cast %60 : vector<8xf32> to vector<8x1xf32>
    %62 = vector.broadcast %61 : vector<8x1xf32> to vector<8x8xf32>
    %63 = arith.subf %59, %62 : vector<8x8xf32>
    %64 = math.exp %63 : vector<8x8xf32>
    %cst_23 = arith.constant dense<0.000000e+00> : vector<8xf32>
    %65 = vector.multi_reduction <add>, %64, %cst_23 [1] : vector<8x8xf32> to vector<8xf32>
    %66 = vector.shape_cast %65 : vector<8xf32> to vector<8x1xf32>
    %67 = tpu.reciprocal %66 {approx = true} : vector<8x1xf32> -> vector<8x1xf32>
    %68 = vector.broadcast %67 : vector<8x1xf32> to vector<8x8xf32>
    %69 = arith.mulf %64, %68 : vector<8x8xf32>
    %70 = arith.truncf %69 : vector<8x8xf32> to vector<8x8xbf16>
    %cst_24 = arith.constant dense<0.000000e+00> : vector<8x16xf32>
    %71 = tpu.matmul %70, %53, %cst_24 {dimension_numbers = #tpu.dot_dimension_numbers<[1], [0], [0], [1], [0, 0, 1, 1], [], []>} : vector<8x8xbf16>, vector<8x16xbf16>, vector<8x16xf32> -> vector<8x16xf32>
    %72 = vector.extract_strided_slice %1 {offsets = [0, 48], sizes = [8, 16], strides = [1, 1]} : vector<8x64xbf16> to vector<8x16xbf16>
    %73 = vector.extract_strided_slice %3 {offsets = [0, 48], sizes = [8, 16], strides = [1, 1]} : vector<8x64xbf16> to vector<8x16xbf16>
    %74 = vector.extract_strided_slice %5 {offsets = [0, 48], sizes = [8, 16], strides = [1, 1]} : vector<8x64xbf16> to vector<8x16xbf16>
    %75 = tpu.transpose %73, [1, 0] : vector<8x16xbf16> -> vector<16x8xbf16>
    %cst_25 = arith.constant dense<0.000000e+00> : vector<8x8xf32>
    %76 = tpu.matmul %72, %75, %cst_25 {dimension_numbers = #tpu.dot_dimension_numbers<[1], [0], [0], [1], [0, 0, 1, 1], [], []>} : vector<8x16xbf16>, vector<16x8xbf16>, vector<8x8xf32> -> vector<8x8xf32>
    %cst_26 = arith.constant 2.500000e-01 : f32
    %77 = vector.broadcast %cst_26 : f32 to vector<8x8xf32>
    %78 = arith.mulf %76, %77 : vector<8x8xf32>
    %cst_27 = arith.constant 0xFF800000 : f32
    %79 = vector.broadcast %cst_27 : f32 to vector<8x8xf32>
    %80 = arith.select %8, %78, %79 : vector<8x8xi1>, vector<8x8xf32>
    %cst_28 = arith.constant dense<0xFF800000> : vector<8xf32>
    %81 = vector.multi_reduction <maximumf>, %80, %cst_28 [1] : vector<8x8xf32> to vector<8xf32>
    %82 = vector.shape_cast %81 : vector<8xf32> to vector<8x1xf32>
    %83 = vector.broadcast %82 : vector<8x1xf32> to vector<8x8xf32>
    %84 = arith.subf %80, %83 : vector<8x8xf32>
    %85 = math.exp %84 : vector<8x8xf32>
    %cst_29 = arith.constant dense<0.000000e+00> : vector<8xf32>
    %86 = vector.multi_reduction <add>, %85, %cst_29 [1] : vector<8x8xf32> to vector<8xf32>
    %87 = vector.shape_cast %86 : vector<8xf32> to vector<8x1xf32>
    %88 = tpu.reciprocal %87 {approx = true} : vector<8x1xf32> -> vector<8x1xf32>
    %89 = vector.broadcast %88 : vector<8x1xf32> to vector<8x8xf32>
    %90 = arith.mulf %85, %89 : vector<8x8xf32>
    %91 = arith.truncf %90 : vector<8x8xf32> to vector<8x8xbf16>
    %cst_30 = arith.constant dense<0.000000e+00> : vector<8x16xf32>
    %92 = tpu.matmul %91, %74, %cst_30 {dimension_numbers = #tpu.dot_dimension_numbers<[1], [0], [0], [1], [0, 0, 1, 1], [], []>} : vector<8x8xbf16>, vector<8x16xbf16>, vector<8x16xf32> -> vector<8x16xf32>
    %93 = tpu.concatenate %29, %50, %71, %92 in 1 : vector<8x16xf32>, vector<8x16xf32>, vector<8x16xf32>, vector<8x16xf32> -> vector<8x64xf32>
    %94 = arith.truncf %93 : vector<8x64xf32> to vector<8x64xbf16>
    %c0_31 = arith.constant 0 : index
    %c0_32 = arith.constant 0 : index
    %c0_33 = arith.constant 0 : index
    %95 = vector.load %arg5[%c0_31, %c0_32, %c0_33] : memref<1x8x64xbf16, #tpu.memory_space<vmem>>, vector<1x8x64xbf16>
    %96 = vector.shape_cast %95 : vector<1x8x64xbf16> to vector<8x64xbf16>
    %97 = vector.shape_cast %94 : vector<8x64xbf16> to vector<1x8x64xbf16>
    tpu.vector_store %arg5[%c0_31, %c0_32, %c0_33], %97 {strides = array<i32>} : memref<1x8x64xbf16, #tpu.memory_space<vmem>>, vector<1x8x64xbf16>,
    return
  }
  func.func @transform_0(%arg0: i32, %arg1: i32) -> (i32, i32, i32) {
    %c0_i32 = arith.constant 0 : i32
    %c0_i32_0 = arith.constant 0 : i32
    return %arg0, %c0_i32, %arg1 : i32, i32, i32
  }
  func.func @transform_1(%arg0: i32, %arg1: i32) -> (i32, i32, i32) {
    %c0_i32 = arith.constant 0 : i32
    %c0_i32_0 = arith.constant 0 : i32
    return %arg0, %c0_i32, %arg1 : i32, i32, i32
  }
  func.func @transform_2(%arg0: i32, %arg1: i32) -> (i32, i32, i32) {
    %c0_i32 = arith.constant 0 : i32
    %c0_i32_0 = arith.constant 0 : i32
    return %arg0, %c0_i32, %arg1 : i32, i32, i32
  }
  func.func @transform_3(%arg0: i32, %arg1: i32) -> (i32, i32, i32) {
    %c0_i32 = arith.constant 0 : i32
    %c0_i32_0 = arith.constant 0 : i32
    return %arg0, %c0_i32, %arg1 : i32, i32, i32
  }
}

module attributes {stable_mosaic.version = 11 : i64} {
  func.func @_lnf_lmhead_kernel(%arg0: i32, %arg1: i32, %arg2: memref<16x64xf32, #tpu.memory_space<vmem>>, %arg3: memref<1x64xf32, #tpu.memory_space<vmem>>, %arg4: memref<1x64xf32, #tpu.memory_space<vmem>>, %arg5: memref<128x64xbf16, #tpu.memory_space<vmem>>, %arg6: memref<16x128xf32, #tpu.memory_space<vmem>>) attributes {dimension_semantics = [#tpu.dimension_semantics<parallel>, #tpu.dimension_semantics<parallel>], iteration_bounds = array<i64: 1, 1>, scalar_prefetch = 0 : i64, scratch_operands = 0 : i64, tpu.core_type = #tpu.core_type<tc>, window_params = [{transform_indices = @transform_0, window_bounds = array<i64: 16, 64>}, {pipeline_mode = #tpu.pipeline_mode<synchronous>, transform_indices = @transform_1, window_bounds = array<i64: 1, 64>}, {pipeline_mode = #tpu.pipeline_mode<synchronous>, transform_indices = @transform_2, window_bounds = array<i64: 1, 64>}, {transform_indices = @transform_3, window_bounds = array<i64: 128, 64>}, {transform_indices = @transform_4, window_bounds = array<i64: 16, 128>}]} {
    %c0 = arith.constant 0 : index
    %c0_0 = arith.constant 0 : index
    %0 = vector.load %arg2[%c0, %c0_0] : memref<16x64xf32, #tpu.memory_space<vmem>>, vector<16x64xf32>
    %c0_1 = arith.constant 0 : index
    %c0_2 = arith.constant 0 : index
    %1 = vector.load %arg3[%c0_1, %c0_2] : memref<1x64xf32, #tpu.memory_space<vmem>>, vector<1x64xf32>
    %c0_3 = arith.constant 0 : index
    %c0_4 = arith.constant 0 : index
    %2 = vector.load %arg4[%c0_3, %c0_4] : memref<1x64xf32, #tpu.memory_space<vmem>>, vector<1x64xf32>
    %cst = arith.constant dense<0.000000e+00> : vector<16xf32>
    %3 = vector.multi_reduction <add>, %0, %cst [1] : vector<16x64xf32> to vector<16xf32>
    %4 = vector.shape_cast %3 : vector<16xf32> to vector<16x1xf32>
    %cst_5 = arith.constant 6.400000e+01 : f32
    %5 = vector.broadcast %cst_5 : f32 to vector<16x1xf32>
    %6 = arith.divf %4, %5 : vector<16x1xf32>
    %7 = vector.broadcast %6 : vector<16x1xf32> to vector<16x64xf32>
    %8 = arith.subf %0, %7 : vector<16x64xf32>
    %9 = arith.mulf %8, %8 : vector<16x64xf32>
    %cst_6 = arith.constant dense<0.000000e+00> : vector<16xf32>
    %10 = vector.multi_reduction <add>, %9, %cst_6 [1] : vector<16x64xf32> to vector<16xf32>
    %11 = vector.shape_cast %10 : vector<16xf32> to vector<16x1xf32>
    %cst_7 = arith.constant 6.400000e+01 : f32
    %12 = vector.broadcast %cst_7 : f32 to vector<16x1xf32>
    %13 = arith.divf %11, %12 : vector<16x1xf32>
    %14 = vector.broadcast %6 : vector<16x1xf32> to vector<16x64xf32>
    %15 = arith.subf %0, %14 : vector<16x64xf32>
    %cst_8 = arith.constant 9.99999974E-6 : f32
    %16 = vector.broadcast %cst_8 : f32 to vector<16x1xf32>
    %17 = arith.addf %13, %16 : vector<16x1xf32>
    %18 = math.rsqrt %17 : vector<16x1xf32>
    %19 = vector.broadcast %18 : vector<16x1xf32> to vector<16x64xf32>
    %20 = arith.mulf %15, %19 : vector<16x64xf32>
    %21 = vector.broadcast %1 : vector<1x64xf32> to vector<16x64xf32>
    %22 = arith.mulf %20, %21 : vector<16x64xf32>
    %23 = vector.broadcast %2 : vector<1x64xf32> to vector<16x64xf32>
    %24 = arith.addf %22, %23 : vector<16x64xf32>
    %25 = arith.truncf %24 : vector<16x64xf32> to vector<16x64xbf16>
    %c0_9 = arith.constant 0 : index
    %c0_10 = arith.constant 0 : index
    %26 = vector.load %arg5[%c0_9, %c0_10] : memref<128x64xbf16, #tpu.memory_space<vmem>>, vector<128x64xbf16>
    %cst_11 = arith.constant dense<0.000000e+00> : vector<16x128xf32>
    %27 = tpu.matmul %25, %26, %cst_11 {dimension_numbers = #tpu.dot_dimension_numbers<[1], [1], [0], [0], [0, 0, 1, 0], [], []>} : vector<16x64xbf16>, vector<128x64xbf16>, vector<16x128xf32> -> vector<16x128xf32>
    %c0_12 = arith.constant 0 : index
    %c0_13 = arith.constant 0 : index
    %28 = vector.load %arg6[%c0_12, %c0_13] : memref<16x128xf32, #tpu.memory_space<vmem>>, vector<16x128xf32>
    tpu.vector_store %arg6[%c0_12, %c0_13], %27 {strides = array<i32>} : memref<16x128xf32, #tpu.memory_space<vmem>>, vector<16x128xf32>,
    return
  }
  func.func @transform_0(%arg0: i32, %arg1: i32) -> (i32, i32) {
    %c0_i32 = arith.constant 0 : i32
    %c0_i32_0 = arith.constant 0 : i32
    return %arg0, %c0_i32 : i32, i32
  }
  func.func @transform_1(%arg0: i32, %arg1: i32) -> (i32, i32) {
    %c0_i32 = arith.constant 0 : i32
    %c0_i32_0 = arith.constant 0 : i32
    %c0_i32_1 = arith.constant 0 : i32
    return %c0_i32, %c0_i32_0 : i32, i32
  }
  func.func @transform_2(%arg0: i32, %arg1: i32) -> (i32, i32) {
    %c0_i32 = arith.constant 0 : i32
    %c0_i32_0 = arith.constant 0 : i32
    %c0_i32_1 = arith.constant 0 : i32
    return %c0_i32, %c0_i32_0 : i32, i32
  }
  func.func @transform_3(%arg0: i32, %arg1: i32) -> (i32, i32) {
    %c0_i32 = arith.constant 0 : i32
    %c0_i32_0 = arith.constant 0 : i32
    return %arg1, %c0_i32 : i32, i32
  }
  func.func @transform_4(%arg0: i32, %arg1: i32) -> (i32, i32) {
    %c0_i32 = arith.constant 0 : i32
    return %arg0, %arg1 : i32, i32
  }
}

</mosaic_0001>

<bundles_post_ra>
// kernel: gpt_forward.9
= control target key start
LH: loop header
LB: loop body
LE: loop exit
PB: predicated region body
PF: predicated region fallthrough
CT: control target
= control target key end

     0   :  { %vm28_vm0 = vcmask 523264   ;;  %v257_v15 = vmov 0   ;;  %v83_v40 = vlaneseq  ;;  %vm188_vm1 = vcmask 519168   ;;  %s258_s25 = smov 64   ;;  %s367_s0 = inlined_call_operand.vmem [shape: f32[16,64], index: 0, kind: input, shape index: {}]   ;;  %s368_s3 = inlined_call_operand.vmem [shape: bf16[64,192], index: 3, kind: input, shape index: {}]   ;;  %s369_s1 = inlined_call_operand.vmem [shape: f32[1,64], index: 1, kind: input, shape index: {}]   ;;  %s370_s2 = inlined_call_operand.vmem [shape: f32[1,64], index: 2, kind: input, shape index: {}]   ;;  %s371_s4 = inlined_call_operand.vmem [shape: f32[1,192], index: 4, kind: input, shape index: {}]   ;;  %s372_s5 = inlined_call_operand.vmem [shape: bf16[16,64], index: 5, kind: output, shape index: {0}]   ;;  %s373_s7 = inlined_call_operand.vmem [shape: bf16[16,64], index: 7, kind: output, shape index: {2}]   ;;  %s374_s6 = inlined_call_operand.vmem [shape: bf16[16,64], index: 6, kind: output, shape index: {1}]  }
   0x1   :  { %v24_v0 = vld [vmem:[%s367_s0] sm:$0xff]  ;;  %v25_v1 = vld [vmem:[%s367_s0 + $0x8] sm:$0xff]  ;;  %v241_v14 = vld [vmem:[%s368_s3 + $0x34] ss:$8 sps:$4 sm:$0xff]   ;;  %168 = vmatprep.mubr.bf16.mxu0 %v257_v15 }
   0x2   :  { %v29_v2 = vsel %vm28_vm0, %v24_v0, 0.0  ;;  %v32_v3 = vsel %vm28_vm0, %v25_v1, 0.0  ;;  %v243_v16 = vld [vmem:[%s368_s3 + $0x30] ss:$8 sps:$4 sm:$0xff]   ;;  %144 = vmatprep.subr.bf16.mxu0 %v241_v14  ;;  %v244_v17 = vld [vmem:[%s368_s3 + $0x24] ss:$8 sps:$4 sm:$0xff]  }
   0x3   :  { %30 = vadd.xlane.f32.xlu0 %v29_v2  ;;  %145 = vmatpush1.bf16.msra.mxu0 %v243_v16  ;;  %v246_v18 = vld [vmem:[%s368_s3 + $0x20] ss:$8 sps:$4 sm:$0xff]   ;;  %v247_v19 = vld [vmem:[%s368_s3 + $0x14] ss:$8 sps:$4 sm:$0xff]   ;;  %v249_v20 = vld [vmem:[%s368_s3 + $0x10] ss:$8 sps:$4 sm:$0xff]  }
   0x4   :  { %146 = vmatprep.subr.bf16.mxu0 %v244_v17  ;;  %v250_v21 = vld [vmem:[%s368_s3 + $0x4] ss:$8 sps:$4 sm:$0xff]   ;;  %v252_v22 = vld [vmem:[%s368_s3] ss:$8 sps:$4 sm:$0xff]   ;;  %v84_v41 = vshrl.u32 %v83_v40, 7 }
   0x5   :  { %v220_v31 = vld [vmem:[%s369_s1] ss:$0 sm:$0xff] }
   0x6   :  { %v221_v35 = vld [vmem:[%s370_s2] ss:$0 sm:$0xff]  ;;  %v85_v42 = vsub.s32 0, %v84_v41  ;;  %v89_v44 = vsub.s32 1, %v84_v41 }
   0x7   :  { %33 = vadd.xlane.f32.xlu0 %v32_v3  ;;  %147 = vmatpush1.bf16.msra.mxu0 %v246_v18  ;;  %v81_v43 = vld [vmem:[%s371_s4] sm:$0x3] }
   0x8   :  { %148 = vmatprep.subr.bf16.mxu0 %v247_v19  ;;  %v86_v45 = vrot.slane %v81_v43, %v85_v42  ;;  %v90_v46 = vrot.slane %v81_v43, %v89_v44 }
   0xb   :  { %149 = vmatpush1.bf16.msra.mxu0 %v249_v20 }
   0xc   :  { %150 = vmatprep.subr.bf16.mxu0 %v250_v21 }
   0xf   :  { %151 = vmatpush1.bf16.msra.mxu0 %v252_v22 }
  0x8c   :  { %v31_v4 = vpop.xlane.xlu0 %30 }
  0x8d   :  { %v36_v5 = vmul.f32 0.015625, %v31_v4 }
  0x8f   :  { %v38_v6 = vsub.f32 %v24_v0, %v36_v5 }
  0x90   :  { %v34_v7 = vpop.xlane.xlu0 %33 }
  0x91   :  { %v37_v8 = vmul.f32 0.015625, %v34_v7  ;;  %v40_v9 = vmul.f32 %v38_v6, %v38_v6 }
  0x93   :  { %v39_v10 = vsub.f32 %v25_v1, %v37_v8  ;;  %v42_v11 = vsel %vm28_vm0, %v40_v9, 0.0 }
  0x94   :  { %43 = vadd.xlane.f32.xlu1 %v42_v11 }
  0x95   :  { %v41_v12 = vmul.f32 %v39_v10, %v39_v10 }
  0x97   :  { %v45_v13 = vsel %vm28_vm0, %v41_v12, 0.0 }
  0x98   :  { %46 = vadd.xlane.f32.xlu1 %v45_v13 }
 0x11d   :  { %v44_v23 = vpop.xlane.xlu1 %43 }
 0x11e   :  { %v48_v24 = vmul.f32 0.015625, %v44_v23 }
 0x120   :  { %v50_v25 = vadd.f32 1e-05, %v48_v24 }
 0x121   :  { %v47_v26 = vpop.xlane.xlu1 %46 }
 0x122   :  { %253 = vrsqrt.f32 %v50_v25  ;;  %v49_v27 = vmul.f32 0.015625, %v47_v26 }
 0x124   :  { %v51_v28 = vadd.f32 1e-05, %v49_v27 }
 0x126   :  { %255 = vrsqrt.f32 %v51_v28 }
 0x12f   :  { %v254_v29 = vpop.eup %253 }
 0x130   :  { %v54_v30 = vmul.f32 %v254_v29, %v38_v6 }
 0x132   :  { %v62_v34 = vmul.f32 %v220_v31, %v54_v30 }
 0x133   :  { %v256_v32 = vpop.eup %255 }
 0x134   :  { %v55_v33 = vmul.f32 %v256_v32, %v39_v10  ;;  %v70_v37 = vadd.f32 %v221_v35, %v62_v34 }
 0x136   :  { %v63_v36 = vmul.f32 %v220_v31, %v55_v33 }
 0x138   :  { %v71_v38 = vadd.f32 %v221_v35, %v63_v36 }
 0x13a   :  { %v72_v39 = vpack.c.bf16 %v71_v38, %v70_v37 }
 0x13c   :  { %230 = vmatmul.mubr.msk.bf16.vlgmr.msra.gmra.mxu0 %vm28_vm0, %v72_v39 }
 0x1fc   :  { %v170_v47 = vpop.f32.mrf.mxu0 }
 0x1fd   :  { %v171_v48 = vadd.f32 %v170_v47, %v86_v45 }
 0x1fe   :  { %v172_v49 = vpop.f32.mrf.mxu0 }
 0x1ff   :  { %v235_v50 = vpack.c.bf16 %v171_v48, %v171_v48  ;;  %v173_v51 = vadd.f32 %v172_v49, %v90_v46 }
 0x200   :  { %v174_v52 = vpop.f32.mrf.mxu0 }
 0x201   :  { %189 = vst.msk [vmem:[%s372_s5] sm:$0xf] %vm188_vm1, %v235_v50  ;;  %v237_v53 = vpack.c.bf16 %v173_v51, %v173_v51  ;;  %v175_v54 = vadd.f32 %v174_v52, %v86_v45  ;;  %191 = vrot.lane.b32.xlu0 %v235_v50, %s258_s25 }
 0x202   :  { %v176_v55 = vpop.f32.mrf.mxu0 }
 0x203   :  { %206 = vst.msk [vmem:[%s373_s7] sm:$0xf] %vm188_vm1, %v237_v53  ;;  %v236_v56 = vpack.c.bf16 %v175_v54, %v175_v54  ;;  %v177_v57 = vadd.f32 %v176_v55, %v90_v46 }
 0x205   :  { %190 = vst.msk [vmem:[%s372_s5 + $0x4] sm:$0xf] %vm188_vm1, %v236_v56  ;;  %v238_v58 = vpack.c.bf16 %v177_v57, %v177_v57  ;;  %193 = vrot.lane.b32.xlu1 %v236_v56, %s258_s25 }
 0x207   :  { %207 = vst.msk [vmem:[%s373_s7 + $0x4] sm:$0xf] %vm188_vm1, %v238_v58 }
 0x273   :  { %v192_v59 = vpop.permute.xlu0 %191 }
 0x274   :  { %197 = vst.msk [vmem:[%s374_s6] sm:$0xf] %vm188_vm1, %v192_v59 }
 0x277   :  { %v194_v60 = vpop.permute.xlu1 %193 }
 0x278   :  { %198 = vst.msk [vmem:[%s374_s6 + $0x4] sm:$0xf] %vm188_vm1, %v194_v60 }

// kernel: gpt_forward.11
= control target key start
LH: loop header
LB: loop body
LE: loop exit
PB: predicated region body
PF: predicated region fallthrough
CT: control target
= control target key end

     0   :  { %v152_v0 = vmov 0.0   ;;  %vm153_vm0 = vmmov 0   ;;  %vm57_vm1 = vcmask 523264   ;;  %s212_s2 = inlined_call_operand.vmem [shape: bf16[64,64], index: 2, kind: input, shape index: {}]   ;;  %s213_s0 = inlined_call_operand.vmem [shape: bf16[16,64], index: 0, kind: input, shape index: {}]   ;;  %s214_s1 = inlined_call_operand.vmem [shape: f32[16,64], index: 1, kind: input, shape index: {}]   ;;  %s215_s3 = inlined_call_operand.vmem [shape: f32[1,64], index: 3, kind: input, shape index: {}]   ;;  %s216_s4 = inlined_call_operand.vmem [shape: f32[16,64], index: 4, kind: output, shape index: {}]  }
   0x1   :  { %133 = vmatprep.subr.bf16.mxu0 %v152_v0  ;;  %v147_v1 = vld [vmem:[%s212_s2 + $0x18] sm:$0xff]   ;;  %141 = vmatprep.mubr.msk.bf16.mxu0 %vm153_vm0, %v152_v0  ;;  %v148_v2 = vld [vmem:[%s212_s2 + $0x10] sm:$0xff]   ;;  %v149_v3 = vld [vmem:[%s212_s2 + $0x8] sm:$0xff]  }
   0x2   :  { %134 = vmatpush3.bf16.msra.mxu0 %v147_v1  ;;  %v150_v4 = vld [vmem:[%s212_s2] sm:$0xff]   ;;  %v103_v11 = vld [vmem:[%s214_s1 + $0x8] sm:$0xff] }
   0x3   :  { %135 = vmatprep.subr.bf16.mxu0 %v152_v0  ;;  %v151_v5 = vld [vmem:[%s213_s0] sm:$0xff]  }
   0x4   :  { %v102_v6 = vld [vmem:[%s214_s1] sm:$0xff] }
   0x5   :  { %v127_v8 = vld [vmem:[%s215_s3] ss:$0 sm:$0xff] }
   0x6   :  { %136 = vmatpush3.bf16.msra.mxu0 %v148_v2 }
   0x7   :  { %137 = vmatprep.subr.bf16.mxu0 %v152_v0 }
   0xa   :  { %138 = vmatpush3.bf16.msra.mxu0 %v149_v3 }
   0xb   :  { %139 = vmatprep.subr.bf16.mxu0 %v152_v0 }
   0xe   :  { %140 = vmatpush3.bf16.msra.mxu0 %v150_v4 }
  0x11   :  { %142 = vmatmul.mubr.msk.bf16.vlgmr.msra.gmra.mxu0 %vm57_vm1, %v151_v5 }
  0xd1   :  { %v95_v7 = vpop.f32.mrf.mxu0 }
  0xd2   :  { %v104_v9 = vadd.f32 %v102_v6, %v95_v7 }
  0xd3   :  { %v143_v10 = vpop.f32.mrf.mxu0 }
  0xd4   :  { %v113_v12 = vadd.f32 %v127_v8, %v104_v9 }
  0xd5   :  { %v98_v13 = vpop.f32.mrf.mxu0 }
  0xd6   :  { %115 = vst.msk [vmem:[%s216_s4] sm:$0xff] %vm57_vm1, %v113_v12  ;;  %v105_v14 = vadd.f32 %v103_v11, %v98_v13 }
  0xd7   :  { %v144_v15 = vpop.f32.mrf.mxu0 }
  0xd8   :  { %v114_v16 = vadd.f32 %v127_v8, %v105_v14 }
  0xda   :  { %116 = vst.msk [vmem:[%s216_s4 + $0x8] sm:$0xff] %vm57_vm1, %v114_v16 }

// kernel: gpt_forward.12
= control target key start
LH: loop header
LB: loop body
LE: loop exit
PB: predicated region body
PF: predicated region fallthrough
CT: control target
= control target key end

     0   :  { %vm31_vm0 = vcmask 523264   ;;  %v495_v15 = vmov 0   ;;  %v86_v56 = vlaneseq  ;;  %s649_s0 = inlined_call_operand.vmem [shape: f32[16,64], index: 0, kind: input, shape index: {}]   ;;  %s650_s3 = inlined_call_operand.vmem [shape: bf16[64,256], index: 3, kind: input, shape index: {}]   ;;  %s651_s1 = inlined_call_operand.vmem [shape: f32[1,64], index: 1, kind: input, shape index: {}]   ;;  %s652_s2 = inlined_call_operand.vmem [shape: f32[1,64], index: 2, kind: input, shape index: {}, may-alias: {2,6}]   ;;  %s653_s5 = inlined_call_operand.vmem [shape: bf16[256,64], index: 5, kind: input, shape index: {}]   ;;  %s654_s4 = inlined_call_operand.vmem [shape: f32[1,256], index: 4, kind: input, shape index: {}]   ;;  %s655_s6 = inlined_call_operand.vmem [shape: f32[1,64], index: 6, kind: input, shape index: {}, may-alias: {2,6}]   ;;  %s656_s7 = inlined_call_operand.vmem [shape: f32[16,64], index: 7, kind: output, shape index: {}]  }
   0x1   :  { %v539_v0 = vld [vmem:[%s649_s0] sm:$0xff]  ;;  %v544_v1 = vld [vmem:[%s649_s0 + $0x8] sm:$0xff]  ;;  %v455_v14 = vld [vmem:[%s650_s3 + $0x34] ss:$8 sps:$4 sm:$0xff]   ;;  %171 = vmatprep.mubr.bf16.mxu0 %v495_v15 }
   0x2   :  { %v32_v2 = vsel %vm31_vm0, %v539_v0, 0.0  ;;  %v35_v3 = vsel %vm31_vm0, %v544_v1, 0.0  ;;  %v457_v16 = vld [vmem:[%s650_s3 + $0x30] ss:$8 sps:$4 sm:$0xff]   ;;  %147 = vmatprep.subr.bf16.mxu0 %v455_v14  ;;  %v458_v17 = vld [vmem:[%s650_s3 + $0x24] ss:$8 sps:$4 sm:$0xff]  }
   0x3   :  { %33 = vadd.xlane.f32.xlu0 %v32_v2  ;;  %148 = vmatpush1.bf16.msra.mxu0 %v457_v16  ;;  %v460_v18 = vld [vmem:[%s650_s3 + $0x20] ss:$8 sps:$4 sm:$0xff]   ;;  %v461_v19 = vld [vmem:[%s650_s3 + $0x14] ss:$8 sps:$4 sm:$0xff]   ;;  %v463_v20 = vld [vmem:[%s650_s3 + $0x10] ss:$8 sps:$4 sm:$0xff]  }
   0x4   :  { %149 = vmatprep.subr.bf16.mxu0 %v458_v17  ;;  %v464_v21 = vld [vmem:[%s650_s3 + $0x4] ss:$8 sps:$4 sm:$0xff]   ;;  %v466_v22 = vld [vmem:[%s650_s3] ss:$8 sps:$4 sm:$0xff]   ;;  %v467_v40 = vld [vmem:[%s653_s5 + $0x78] sm:$0xff]   ;;  %v87_v57 = vshrl.u32 %v86_v56, 7 }
   0x5   :  { %v404_v31 = vld [vmem:[%s651_s1] ss:$0 sm:$0xff]  ;;  %v468_v41 = vld [vmem:[%s653_s5 + $0x38] sm:$0xff]   ;;  %432 = vmatprep.subr.bf16.mxu1 %v467_v40  ;;  %v469_v42 = vld [vmem:[%s653_s5 + $0x70] sm:$0xff]  }
   0x6   :  { %v405_v35 = vld [vmem:[%s652_s2] ss:$0 sm:$0xff]  ;;  %433 = vmatpush3.bf16.msra.mxu1 %v468_v41  ;;  %v470_v43 = vld [vmem:[%s653_s5 + $0x30] sm:$0xff]   ;;  %v471_v44 = vld [vmem:[%s653_s5 + $0x68] sm:$0xff]   ;;  %v88_v58 = vsub.s32 0, %v87_v57  ;;  %v92_v60 = vsub.s32 1, %v87_v57 }
   0x7   :  { %36 = vadd.xlane.f32.xlu0 %v35_v3  ;;  %150 = vmatpush1.bf16.msra.mxu0 %v460_v18  ;;  %v472_v45 = vld [vmem:[%s653_s5 + $0x28] sm:$0xff]   ;;  %v473_v46 = vld [vmem:[%s653_s5 + $0x60] sm:$0xff]   ;;  %v475_v48 = vld [vmem:[%s653_s5 + $0x58] sm:$0xff]  }
   0x8   :  { %151 = vmatprep.subr.bf16.mxu0 %v461_v19  ;;  %434 = vmatprep.subr.bf16.mxu1 %v469_v42  ;;  %v474_v47 = vld [vmem:[%s653_s5 + $0x20] sm:$0xff]   ;;  %v476_v49 = vld [vmem:[%s653_s5 + $0x18] sm:$0xff]   ;;  %v477_v50 = vld [vmem:[%s653_s5 + $0x50] sm:$0xff]  }
   0x9   :  { %v478_v51 = vld [vmem:[%s653_s5 + $0x10] sm:$0xff]   ;;  %v479_v52 = vld [vmem:[%s653_s5 + $0x48] sm:$0xff]   ;;  %v481_v54 = vld [vmem:[%s653_s5 + $0x40] sm:$0xff]  }
   0xa   :  { %435 = vmatpush3.bf16.msra.mxu1 %v470_v43  ;;  %v480_v53 = vld [vmem:[%s653_s5 + $0x8] sm:$0xff]   ;;  %v482_v55 = vld [vmem:[%s653_s5] sm:$0xff]  }
   0xb   :  { %152 = vmatpush1.bf16.msra.mxu0 %v463_v20  ;;  %436 = vmatprep.subr.bf16.mxu1 %v471_v44  ;;  %v84_v59 = vld [vmem:[%s654_s4] sm:$0x3] }
   0xc   :  { %153 = vmatprep.subr.bf16.mxu0 %v464_v21  ;;  %v89_v61 = vrot.slane %v84_v59, %v88_v58  ;;  %v93_v62 = vrot.slane %v84_v59, %v92_v60 }
   0xe   :  { %437 = vmatpush3.bf16.msra.mxu1 %v472_v45 }
   0xf   :  { %154 = vmatpush1.bf16.msra.mxu0 %v466_v22  ;;  %438 = vmatprep.subr.bf16.mxu1 %v473_v46 }
  0x12   :  { %439 = vmatpush3.bf16.msra.mxu1 %v474_v47 }
  0x13   :  { %440 = vmatprep.subr.bf16.mxu1 %v475_v48  ;;  %v415_v48 = vld [vmem:[%s655_s6] ss:$0 sm:$0xff] }
  0x16   :  { %441 = vmatpush3.bf16.msra.mxu1 %v476_v49 }
  0x17   :  { %442 = vmatprep.subr.bf16.mxu1 %v477_v50 }
  0x1a   :  { %443 = vmatpush3.bf16.msra.mxu1 %v478_v51 }
  0x1b   :  { %444 = vmatprep.subr.bf16.mxu1 %v479_v52 }
  0x1e   :  { %445 = vmatpush3.bf16.msra.mxu1 %v480_v53 }
  0x1f   :  { %446 = vmatprep.subr.bf16.mxu1 %v481_v54 }
  0x22   :  { %447 = vmatpush3.bf16.msra.mxu1 %v482_v55 }
  0x8c   :  { %v34_v4 = vpop.xlane.xlu0 %33 }
  0x8d   :  { %v39_v5 = vmul.f32 0.015625, %v34_v4 }
  0x8f   :  { %v41_v6 = vsub.f32 %v539_v0, %v39_v5 }
  0x90   :  { %v37_v7 = vpop.xlane.xlu0 %36 }
  0x91   :  { %v40_v8 = vmul.f32 0.015625, %v37_v7  ;;  %v43_v9 = vmul.f32 %v41_v6, %v41_v6 }
  0x93   :  { %v42_v10 = vsub.f32 %v544_v1, %v40_v8  ;;  %v45_v11 = vsel %vm31_vm0, %v43_v9, 0.0 }
  0x94   :  { %46 = vadd.xlane.f32.xlu1 %v45_v11 }
  0x95   :  { %v44_v12 = vmul.f32 %v42_v10, %v42_v10 }
  0x97   :  { %v48_v13 = vsel %vm31_vm0, %v44_v12, 0.0 }
  0x98   :  { %49 = vadd.xlane.f32.xlu1 %v48_v13 }
 0x11d   :  { %v47_v23 = vpop.xlane.xlu1 %46 }
 0x11e   :  { %v51_v24 = vmul.f32 0.015625, %v47_v23 }
 0x120   :  { %v53_v25 = vadd.f32 1e-05, %v51_v24 }
 0x121   :  { %v50_v26 = vpop.xlane.xlu1 %49 }
 0x122   :  { %483 = vrsqrt.f32 %v53_v25  ;;  %v52_v27 = vmul.f32 0.015625, %v50_v26 }
 0x124   :  { %v54_v28 = vadd.f32 1e-05, %v52_v27 }
 0x126   :  { %485 = vrsqrt.f32 %v54_v28 }
 0x12f   :  { %v484_v29 = vpop.eup %483 }
 0x130   :  { %v57_v30 = vmul.f32 %v484_v29, %v41_v6 }
 0x132   :  { %v65_v34 = vmul.f32 %v404_v31, %v57_v30 }
 0x133   :  { %v486_v32 = vpop.eup %485 }
 0x134   :  { %v58_v33 = vmul.f32 %v486_v32, %v42_v10  ;;  %v73_v37 = vadd.f32 %v405_v35, %v65_v34 }
 0x136   :  { %v66_v36 = vmul.f32 %v404_v31, %v58_v33 }
 0x138   :  { %v74_v38 = vadd.f32 %v405_v35, %v66_v36 }
 0x13a   :  { %v75_v39 = vpack.c.bf16 %v74_v38, %v73_v37 }
 0x13c   :  { %414 = vmatmul.mubr.msk.bf16.vlgmr.msra.gmra.mxu0 %vm31_vm0, %v75_v39 }
 0x1fc   :  { %v173_v63 = vpop.f32.mrf.mxu0 }
 0x1fd   :  { %v174_v2 = vadd.f32 %v173_v63, %v89_v61 }
 0x1fe   :  { %v175_v3 = vpop.f32.mrf.mxu0 }
 0x1ff   :  { %v186_v4 = vmul.f32 0.044715, %v174_v2  ;;  %v176_v5 = vadd.f32 %v175_v3, %v93_v62  ;;  %v182_v40 = vmul.f32 0.5, %v174_v2 }
 0x200   :  { %v177_v6 = vpop.f32.mrf.mxu0 }
 0x201   :  { %v190_v7 = vmul.f32 %v186_v4, %v174_v2  ;;  %v187_v8 = vmul.f32 0.044715, %v176_v5  ;;  %v178_v9 = vadd.f32 %v177_v6, %v89_v61  ;;  %v183_v37 = vmul.f32 0.5, %v176_v5 }
 0x202   :  { %v179_v10 = vpop.f32.mrf.mxu0 }
 0x203   :  { %v194_v11 = vmul.f32 %v190_v7, %v174_v2  ;;  %v188_v12 = vmul.f32 0.044715, %v178_v9  ;;  %v180_v13 = vadd.f32 %v179_v10, %v93_v62  ;;  %v191_v14 = vmul.f32 %v187_v8, %v176_v5 }
 0x204   :  { %v184_v35 = vmul.f32 0.5, %v178_v9 }
 0x205   :  { %v192_v15 = vmul.f32 %v188_v12, %v178_v9  ;;  %v189_v16 = vmul.f32 0.044715, %v180_v13  ;;  %v195_v17 = vmul.f32 %v191_v14, %v176_v5  ;;  %v198_v18 = vadd.f32 %v194_v11, %v174_v2 }
 0x206   :  { %v185_v38 = vmul.f32 0.5, %v180_v13 }
 0x207   :  { %v196_v19 = vmul.f32 %v192_v15, %v178_v9  ;;  %v193_v20 = vmul.f32 %v189_v16, %v180_v13  ;;  %v199_v21 = vadd.f32 %v195_v17, %v176_v5  ;;  %v202_v22 = vmul.f32 0.7978846, %v198_v18 }
 0x209   :  { %v197_v23 = vmul.f32 %v193_v20, %v180_v13  ;;  %v203_v24 = vmul.f32 0.7978846, %v199_v21  ;;  %v200_v25 = vadd.f32 %v196_v19, %v178_v9 }
 0x20b   :  { %v201_v26 = vadd.f32 %v197_v23, %v180_v13  ;;  %487 = vtanh.f32 %v203_v24  ;;  %v204_v27 = vmul.f32 0.7978846, %v200_v25 }
 0x20c   :  { %489 = vtanh.f32 %v202_v22 }
 0x20d   :  { %v205_v28 = vmul.f32 0.7978846, %v201_v26  ;;  %491 = vtanh.f32 %v204_v27 }
 0x20f   :  { %493 = vtanh.f32 %v205_v28 }
 0x218   :  { %v488_v29 = vpop.eup %487 }
 0x219   :  { %v490_v30 = vpop.eup %489  ;;  %v211_v32 = vadd.f32 1.0, %v488_v29 }
 0x21a   :  { %v492_v31 = vpop.eup %491  ;;  %v210_v36 = vadd.f32 1.0, %v490_v30 }
 0x21b   :  { %v212_v33 = vadd.f32 1.0, %v492_v31  ;;  %v215_v42 = vmul.f32 %v211_v32, %v183_v37 }
 0x21c   :  { %v494_v34 = vpop.eup %493  ;;  %v214_v44 = vmul.f32 %v210_v36, %v182_v40 }
 0x21d   :  { %v213_v39 = vadd.f32 1.0, %v494_v34  ;;  %v216_v41 = vmul.f32 %v212_v33, %v184_v35 }
 0x21f   :  { %v217_v43 = vmul.f32 %v213_v39, %v185_v38  ;;  %v218_v46 = vpack.c.bf16 %v216_v41, %v214_v44 }
 0x221   :  { %v219_v45 = vpack.c.bf16 %v217_v43, %v215_v42 }
 0x223   :  { %387 = vmatprep.mubr.bf16.mxu1 %v219_v45 }
 0x224   :  { %388 = vmatmul.mubr.bf16.vlgmr.msra.gmra.mxu1 %v218_v46 }
 0x2e4   :  { %v448_v47 = vpop.f32.mrf.mxu1 }
 0x2e6   :  { %v449_v49 = vpop.f32.mrf.mxu1 }
 0x2e7   :  { %v450_v50 = vadd.f32 %v449_v49, %v448_v47 }
 0x2e8   :  { %v451_v51 = vpop.f32.mrf.mxu1 }
 0x2e9   :  { %v390_v52 = vadd.f32 %v450_v50, %v415_v48 }
 0x2ea   :  { %v452_v53 = vpop.f32.mrf.mxu1 }
 0x2eb   :  { %v396_v54 = vadd.f32 %v390_v52, %v539_v0  ;;  %v453_v55 = vadd.f32 %v452_v53, %v451_v51 }
 0x2ed   :  { %398 = vst.msk [vmem:[%s656_s7] sm:$0xff] %vm31_vm0, %v396_v54  ;;  %v393_v56 = vadd.f32 %v453_v55, %v415_v48 }
 0x2ef   :  { %v397_v57 = vadd.f32 %v393_v56, %v544_v1 }
 0x2f1   :  { %399 = vst.msk [vmem:[%s656_s7 + $0x8] sm:$0xff] %vm31_vm0, %v397_v57 }

// kernel: gpt_forward.10
= control target key start
LH: loop header
LB: loop body
LE: loop exit
PB: predicated region body
PF: predicated region fallthrough
CT: control target
= control target key end

     0   :  { %s1029_s12 = smov 0   ;;  %s1031_s13 = smov 0   ;;  %s1158_s0 = inlined_call_operand.vmem [shape: bf16[2,8,64], index: 0, kind: input, shape index: {}]   ;;  %s1159_s1 = inlined_call_operand.vmem [shape: bf16[2,8,64], index: 1, kind: input, shape index: {}]   ;;  %s1160_s2 = inlined_call_operand.vmem [shape: bf16[2,8,64], index: 2, kind: input, shape index: {}]   ;;  %s1161_s3 = inlined_call_operand.vmem [shape: bf16[2,8,64], index: 3, kind: output, shape index: {}]  }
   0x1   :  { %s1033_s14 = smov 0  }
   0x2 LB: > { %s25_s15 = sadd.s32 1, %s995_s13  ;;  %p844_p0 = scmp.ge.s32.totalorder %s999_s14, 1  ;;  %s999_s14 = sphi %s1033_s14, %s13_s14   ;;  %s995_s13 = sphi %s1031_s13, %s1163_s13   ;;  %s991_s12 = sphi %s1029_s12, %s1162_s12  }
   0x3   : > { %p27_p1 = scmp.ge.s32.totalorder %s25_s15, 2  ;;  %p183_p2 = scmp.lt.s32.totalorder %s999_s14, 3 }
   0x5   : > { %s1165_s15 = smov (%p27_p1, %s25_s15), 0  ;;  %p184_p3 = pnand %p844_p0, %p183_p2 }
   0x6   : > { %p225_p4 = scmp.lt.s32.totalorder (!%p184_p3), %s991_s12, 1  ;;  %s1003_s23 = smov (!%p184_p3), 112  }
   0x7   : > { %187 = sbr.rel (%p184_p3) target bundleno = 1417 (0x589), region = 32  ;;  %s1004_s24 = smov (!%p184_p3), 96  }
   0x8   : > { %s1005_s25 = smov (!%p184_p3), 80   ;;  %s1006_s29 = smov (!%p184_p3), 16  }
   0x9   : > { %s1007_s30 = smov (!%p184_p3), 32   ;;  %s1008_s4 = smov (!%p184_p3), 48  }
   0xc   : > { %v1001_v0 = vmov 0.0   ;;  %vm1002_vm0 = vmmov 0   ;;  %s1167_s12 = smov (!%p225_p4, %s991_s12), 1  ;;  %vm262_vm1 = vcmask 130048   ;;  %v257_v4 = vlaneseq }
   0xd   : > { %878 = vmatprep.subr.bf16.mxu0 %v1001_v0  ;;  %880 = vmatprep.mubr.msk.bf16.mxu0 %vm1002_vm0, %v1001_v0  ;;  %s1053_s16 = sshll.u32 %s1167_s12, 2  ;;  %vm311_vm3 = vcmask 64512   ;;  %vm327_vm4 = vcmask 1043456   ;;  %vm729_vm5 = vcmask 261120   ;;  %vm731_vm6 = vcmask 392192  }
   0xe   : > { %884 = vmatprep.subr.bf16.mxu1 %v1001_v0  ;;  %886 = vmatprep.mubr.msk.bf16.mxu1 %vm1002_vm0, %v1001_v0  ;;  %s238_s19 = scalar_lea.vmem %s1159_s1, %s1053_s16  ;;  %s231_s22 = scalar_lea.vmem %s1158_s0, %s1053_s16  ;;  %v1068_v5 = vshrl.u32 %v257_v4, 7  ;;  %v1070_v6 = vand.u32 127, %v257_v4  ;;  %vm734_vm7 = vcmask 519168  }
   0xf   : > { %v255_v1 = vld [vmem:[%s238_s19] sm:$0xf]  ;;  %s245_s28 = scalar_lea.vmem %s1160_s2, %s1053_s16  ;;  %s252_s7 = scalar_lea.vmem %s1161_s3, %s1053_s16 }
  0x10   : > { %v267_v2 = vsel %vm262_vm1, %v255_v1, 0  ;;  %v254_v3 = vld [vmem:[%s231_s22] sm:$0xf]  ;;  %vm261_vm2 = vcmp.le.s32.totalorder %v1070_v6, %v1068_v5  ;;  %v852_v14 = vcombine.low %v255_v1, %v255_v1 }
  0x11   : > { %879 = vmatpush3.bf16.xpose.msra.mxu0 %v267_v2  ;;  %v851_v15 = vcombine.low %v254_v3, %v254_v3  ;;  %v1088_v21 = vld [vmem:[%s245_s28] sm:$0xf] }
  0x12   : > { %896 = vmatprep.subr.bf16.mxu0 %v1001_v0  ;;  %379 = vrot.lane.b32.xlu1 %v852_v14, %s1003_s23  ;;  %v329_v22 = vsel %vm327_vm4, %v1088_v21, 0  ;;  %v854_v6 = vcombine.low %v1088_v21, %v1088_v21 }
  0x13   : > { %885 = vmatpush3.bf16.msra.mxu1 %v329_v22 }
  0x14   : > { %890 = vmatprep.subr.bf16.mxu1 %v1001_v0 }
  0x16   : > { %374 = vrot.lane.b32.xlu1 %v851_v15, %s1003_s23 }
  0x18   : > { %881 = vmatmul.mubr.msk.bf16.vlgmr.msra.gmra.mxu0 %vm262_vm1, %v254_v3 }
  0x19   : > { %898 = vmatprep.mubr.msk.bf16.mxu0 %vm1002_vm0, %v1001_v0 }
  0x1a   : > { %492 = vrot.lane.b32.xlu1 %v851_v15, %s1004_s24 }
  0x1e   : > { %606 = vrot.lane.b32.xlu1 %v852_v14, %s1005_s25 }
  0x22   : > { %604 = vrot.lane.b32.xlu1 %v851_v15, %s1005_s25 }
  0x84   : > { %v380_v25 = vpop.permute.xlu1 %379 }
  0x85   : > { %v385_v27 = vsel %vm262_vm1, %v380_v25, 0 }
  0x88   : > { %v375_v29 = vpop.permute.xlu1 %374 }
  0x8c   : > { %v493_v31 = vpop.permute.xlu1 %492 }
  0x90   : > { %v607_v33 = vpop.permute.xlu1 %606 }
  0x91   : > { %v612_v34 = vsel %vm262_vm1, %v607_v33, 0 }
  0x94   : > { %v605_v35 = vpop.permute.xlu1 %604 }
  0xd8   : > { %v303_v7 = vpop.f32.mrf.mxu0 }
  0xd9   : > { %v309_v8 = vmul.f32 0.25, %v303_v7 }
  0xda   : > { %v882_v9 = vpop.f32.mrf.mxu0 }
  0xdb   : > { %v310_v10 = vsel %vm261_vm2, %v309_v8, -inf }
  0xdc   : > { %v306_v11 = vpop.f32.mrf.mxu0  ;;  %v312_v12 = vsel %vm311_vm3, %v310_v10, -inf }
  0xdd   : > { %313 = vmax.xlane.f32.xlu0 %v312_v12 }
  0xde   : > { %v883_v13 = vpop.f32.mrf.mxu0 }
 0x166   : > { %v314_v16 = vpop.xlane.xlu0 %313 }
 0x167   : > { %v315_v17 = vsub.f32 %v310_v10, %v314_v16 }
 0x169   : > { %v316_v18 = vmul.f32 1.442695, %v315_v17 }
 0x16b   : > { %961 = vpow2.f32 %v316_v18 }
 0x178   : > { %v962_v19 = vpop.eup %961 }
 0x179   : > { %v318_v20 = vsel %vm311_vm3, %v962_v19, 0.0 }
 0x17a   : > { %319 = vadd.xlane.f32.xlu0 %v318_v20 }
 0x190   : > { %494 = vrot.lane.b32.xlu0 %v852_v14, %s1004_s24 }
 0x203   : > { %v320_v23 = vpop.xlane.xlu0 %319 }
 0x204   : > { %963 = vrcp.f32 %v320_v23 }
 0x207   : > { %v495_v30 = vpop.permute.xlu0 %494 }
 0x208   : > { %v500_v32 = vsel %vm262_vm1, %v495_v30, 0 }
 0x211   : > { %v964_v24 = vpop.eup %963 }
 0x212   : > { %v322_v26 = vmul.f32 %v964_v24, %v962_v19 }
 0x214   : > { %v323_v28 = vpack.c.bf16 %v322_v26, %v322_v26 }
 0x216   : > { %887 = vmatmul.mubr.msk.bf16.vlgmr.msra.gmra.mxu1 %vm311_vm3, %v323_v28 }
 0x217   : > { %891 = vmatpush3.bf16.xpose.msra.mxu1 %v385_v27  ;;  %892 = vmatprep.mubr.msk.bf16.mxu1 %vm1002_vm0, %v1001_v0 }
 0x218   : > { %902 = vmatprep.subr.bf16.mxu1 %v1001_v0 }
 0x21e   : > { %893 = vmatmul.mubr.msk.bf16.vlgmr.msra.gmra.mxu1 %vm262_vm1, %v375_v29 }
 0x21f   : > { %903 = vmatpush3.bf16.xpose.msra.mxu1 %v500_v32  ;;  %904 = vmatprep.mubr.msk.bf16.mxu1 %vm1002_vm0, %v1001_v0 }
 0x220   : > { %914 = vmatprep.subr.bf16.mxu1 %v1001_v0 }
 0x226   : > { %905 = vmatmul.mubr.msk.bf16.vlgmr.msra.gmra.mxu1 %vm262_vm1, %v493_v31 }
 0x227   : > { %915 = vmatpush3.bf16.xpose.msra.mxu1 %v612_v34  ;;  %916 = vmatprep.mubr.msk.bf16.mxu1 %vm1002_vm0, %v1001_v0 }
 0x22e   : > { %917 = vmatmul.mubr.msk.bf16.vlgmr.msra.gmra.mxu1 %vm262_vm1, %v605_v35 }
 0x2d6   : > { %v1109_v36 = vpop.f32.mrf.mxu1 }
 0x2d8   : > { %v888_v37 = vpop.f32.mrf.mxu1 }
 0x2da   : > { %v368_v38 = vpop.f32.mrf.mxu1 }
 0x2dc   : > { %v889_v39 = vpop.f32.mrf.mxu1 }
 0x2de   : > { %v421_v40 = vpop.f32.mrf.mxu1 }
 0x2df   : > { %v427_v41 = vmul.f32 0.25, %v421_v40 }
 0x2e0   : > { %v894_v42 = vpop.f32.mrf.mxu1 }
 0x2e1   : > { %v428_v43 = vsel %vm261_vm2, %v427_v41, -inf }
 0x2e2   : > { %v424_v44 = vpop.f32.mrf.mxu1  ;;  %v429_v45 = vsel %vm311_vm3, %v428_v43, -inf }
 0x2e3   : > { %430 = vmax.xlane.f32.xlu1 %v429_v45 }
 0x2e4   : > { %v895_v46 = vpop.f32.mrf.mxu1 }
 0x2e6   : > { %v536_v47 = vpop.f32.mrf.mxu1 }
 0x2e7   : > { %v542_v48 = vmul.f32 0.25, %v536_v47 }
 0x2e8   : > { %v906_v49 = vpop.f32.mrf.mxu1 }
 0x2e9   : > { %v543_v50 = vsel %vm261_vm2, %v542_v48, -inf }
 0x2ea   : > { %v539_v51 = vpop.f32.mrf.mxu1  ;;  %v544_v52 = vsel %vm311_vm3, %v543_v50, -inf }
 0x2eb   : > { %545 = vmax.xlane.f32.xlu0 %v544_v52 }
 0x2ec   : > { %v907_v53 = vpop.f32.mrf.mxu1 }
 0x2ee   : > { %v648_v54 = vpop.f32.mrf.mxu1 }
 0x2ef   : > { %v654_v55 = vmul.f32 0.25, %v648_v54 }
 0x2f0   : > { %v918_v56 = vpop.f32.mrf.mxu1 }
 0x2f1   : > { %v655_v57 = vsel %vm261_vm2, %v654_v55, -inf }
 0x2f2   : > { %v656_v58 = vsel %vm311_vm3, %v655_v57, -inf  ;;  %v651_v59 = vpop.f32.mrf.mxu1 }
 0x2f3   : > { %657 = vmax.xlane.f32.xlu1 %v656_v58 }
 0x2f4   : > { %v919_v60 = vpop.f32.mrf.mxu1 }
 0x36c   : > { %v431_v61 = vpop.xlane.xlu1 %430 }
 0x36d   : > { %v432_v62 = vsub.f32 %v428_v43, %v431_v61 }
 0x36f   : > { %v433_v63 = vmul.f32 1.442695, %v432_v62 }
 0x371   : > { %965 = vpow2.f32 %v433_v63 }
 0x374   : > { %v546_v1 = vpop.xlane.xlu0 %545 }
 0x375   : > { %v547_v2 = vsub.f32 %v543_v50, %v546_v1 }
 0x377   : > { %v548_v3 = vmul.f32 1.442695, %v547_v2 }
 0x379   : > { %967 = vpow2.f32 %v548_v3 }
 0x37c   : > { %v658_v9 = vpop.xlane.xlu1 %657 }
 0x37d   : > { %v659_v10 = vsub.f32 %v655_v57, %v658_v9 }
 0x37e   : > { %v966_v4 = vpop.eup %965 }
 0x37f   : > { %v435_v7 = vsel %vm311_vm3, %v966_v4, 0.0  ;;  %v660_v11 = vmul.f32 1.442695, %v659_v10 }
 0x380   : > { %436 = vadd.xlane.f32.xlu1 %v435_v7 }
 0x381   : > { %969 = vpow2.f32 %v660_v11 }
 0x386   : > { %v968_v8 = vpop.eup %967 }
 0x387   : > { %v550_v5 = vsel %vm311_vm3, %v968_v8, 0.0 }
 0x388   : > { %551 = vadd.xlane.f32.xlu0 %v550_v5 }
 0x38e   : > { %v970_v12 = vpop.eup %969 }
 0x38f   : > { %v662_v13 = vsel %vm311_vm3, %v970_v12, 0.0 }
 0x391   : > { %556 = vrot.lane.b32.xlu1 %v854_v6, %s1004_s24 }
 0x39e   : > { %444 = vrot.lane.b32.xlu0 %v854_v6, %s1003_s23 }
 0x3b5   : > { %663 = vadd.xlane.f32.xlu1 %v662_v13 }
 0x3c6   : > { %668 = vrot.lane.b32.xlu1 %v854_v6, %s1005_s25 }
 0x409   : > { %v437_v14 = vpop.xlane.xlu1 %436 }
 0x40a   : > { %971 = vrcp.f32 %v437_v14 }
 0x40d   : > { %v557_v20 = vpop.permute.xlu1 %556 }
 0x40e   : > { %v562_v22 = vsel %vm327_vm4, %v557_v20, 0 }
 0x411   : > { %v552_v15 = vpop.xlane.xlu0 %551 }
 0x412   : > { %973 = vrcp.f32 %v552_v15 }
 0x415   : > { %v445_v16 = vpop.permute.xlu0 %444 }
 0x416   : > { %v450_v17 = vsel %vm327_vm4, %v445_v16, 0 }
 0x417   : > { %v972_v18 = vpop.eup %971  ;;  %897 = vmatpush3.bf16.msra.mxu0 %v450_v17 }
 0x418   : > { %908 = vmatprep.subr.bf16.mxu0 %v1001_v0  ;;  %v439_v19 = vmul.f32 %v972_v18, %v966_v4 }
 0x41a   : > { %v440_v21 = vpack.c.bf16 %v439_v19, %v439_v19 }
 0x41c   : > { %899 = vmatmul.mubr.msk.bf16.vlgmr.msra.gmra.mxu0 %vm311_vm3, %v440_v21 }
 0x41d   : > { %909 = vmatpush3.bf16.msra.mxu0 %v562_v22  ;;  %910 = vmatprep.mubr.msk.bf16.mxu0 %vm1002_vm0, %v1001_v0 }
 0x41e   : > { %920 = vmatprep.subr.bf16.mxu0 %v1001_v0 }
 0x41f   : > { %v974_v23 = vpop.eup %973 }
 0x420   : > { %v554_v24 = vmul.f32 %v974_v23, %v968_v8 }
 0x422   : > { %v555_v25 = vpack.c.bf16 %v554_v24, %v554_v24 }
 0x424   : > { %911 = vmatmul.mubr.msk.bf16.vlgmr.msra.gmra.mxu0 %vm311_vm3, %v555_v25 }
 0x425   : > { %922 = vmatprep.mubr.msk.bf16.mxu0 %vm1002_vm0, %v1001_v0 }
 0x43e   : > { %v664_v26 = vpop.xlane.xlu1 %663 }
 0x43f   : > { %975 = vrcp.f32 %v664_v26 }
 0x442   : > { %v669_v27 = vpop.permute.xlu1 %668 }
 0x443   : > { %v674_v28 = vsel %vm327_vm4, %v669_v27, 0 }
 0x444   : > { %921 = vmatpush3.bf16.msra.mxu0 %v674_v28 }
 0x44c   : > { %v976_v29 = vpop.eup %975 }
 0x44d   : > { %v666_v30 = vmul.f32 %v976_v29, %v970_v12 }
 0x44f   : > { %v667_v31 = vpack.c.bf16 %v666_v30, %v666_v30 }
 0x451   : > { %923 = vmatmul.mubr.msk.bf16.vlgmr.msra.gmra.mxu0 %vm311_vm3, %v667_v31 }
 0x4dc   : > { %v486_v32 = vpop.f32.mrf.mxu0 }
 0x4dd   : > { %717 = vrot.lane.b32.xlu0 %v486_v32, %s1006_s29 }
 0x4de   : > { %v900_v33 = vpop.f32.mrf.mxu0 }
 0x4e0   : > { %v489_v34 = vpop.f32.mrf.mxu0 }
 0x4e2   : > { %v901_v35 = vpop.f32.mrf.mxu0 }
 0x4e4   : > { %v598_v37 = vpop.f32.mrf.mxu0 }
 0x4e5   : > { %721 = vrot.lane.b32.xlu1 %v598_v37, %s1007_s30 }
 0x4e6   : > { %v912_v0 = vpop.f32.mrf.mxu0 }
 0x4e8   : > { %v601_v38 = vpop.f32.mrf.mxu0 }
 0x4ea   : > { %v913_v39 = vpop.f32.mrf.mxu0 }
 0x511   : > { %v710_v40 = vpop.f32.mrf.mxu0 }
 0x512   : > { %725 = vrot.lane.b32.xlu0 %v710_v40, %s1008_s4 }
 0x513   : > { %v924_v41 = vpop.f32.mrf.mxu0 }
 0x515   : > { %v713_v42 = vpop.f32.mrf.mxu0 }
 0x517   : > { %v925_v43 = vpop.f32.mrf.mxu0 }
 0x54f   : > { %v718_v44 = vpop.permute.xlu0 %717 }
 0x550   : > { %v728_v46 = vsel %vm262_vm1, %v1109_v36, %v718_v44 }
 0x557   : > { %v722_v45 = vpop.permute.xlu1 %721 }
 0x558   : > { %v730_v47 = vsel %vm729_vm5, %v728_v46, %v722_v45 }
 0x584   : > { %v726_v48 = vpop.permute.xlu0 %725 }
 0x585   : > { %v732_v49 = vsel %vm731_vm6, %v730_v47, %v726_v48 }
 0x586   : > { %v733_v50 = vpack.c.bf16 %v732_v49, %v732_v49 }
 0x588   : > { %735 = vst.msk [vmem:[%s252_s7] sm:$0xf] %vm734_vm7, %v733_v50 }
 0x589 PF: > { %s13_s14 = sadd.s32 1, %s999_s14   ;;  %s1162_s12 = smov %s995_s13 }
 0x58a   : > { %p10_p5 = scmp.ge.s32.totalorder %s13_s14, 4   ;;  %s1163_s13 = smov %s1165_s15 }
 0x58c   :  { %12 = sbr.rel (!%p10_p5) target bundleno = 2 (0x2), region = 68 }

// kernel: gpt_forward.17
= control target key start
LH: loop header
LB: loop body
LE: loop exit
PB: predicated region body
PF: predicated region fallthrough
CT: control target
= control target key end

     0   :  { %vm22_vm0 = vcmask 523264   ;;  %v251_v4 = vmov 0.0   ;;  %vm252_vm1 = vmmov 0   ;;  %s333_s0 = inlined_call_operand.vmem [shape: f32[16,64], index: 0, kind: input, shape index: {}]   ;;  %s334_s3 = inlined_call_operand.vmem [shape: bf16[128,64], index: 3, kind: input, shape index: {}]   ;;  %s335_s1 = inlined_call_operand.vmem [shape: f32[1,64], index: 1, kind: input, shape index: {}]   ;;  %s336_s2 = inlined_call_operand.vmem [shape: f32[1,64], index: 2, kind: input, shape index: {}]   ;;  %s337_s4 = inlined_call_operand.vmem [shape: f32[16,128], index: 4, kind: output, shape index: {}]  }
   0x1   :  { %v18_v0 = vld [vmem:[%s333_s0] sm:$0xff]  ;;  %v19_v1 = vld [vmem:[%s333_s0 + $0x8] sm:$0xff]  ;;  %217 = vmatprep.subr.bf16.mxu0 %v251_v4  ;;  %v239_v5 = vld [vmem:[%s334_s3 + $0x38] sm:$0xff]   ;;  %233 = vmatprep.mubr.msk.bf16.mxu0 %vm252_vm1, %v251_v4 }
   0x2   :  { %v23_v2 = vsel %vm22_vm0, %v18_v0, 0.0  ;;  %v26_v3 = vsel %vm22_vm0, %v19_v1, 0.0  ;;  %v148_v6 = vsel %vm22_vm0, %v239_v5, 0  ;;  %v240_v7 = vld [vmem:[%s334_s3 + $0x30] sm:$0xff]   ;;  %v241_v9 = vld [vmem:[%s334_s3 + $0x28] sm:$0xff]   ;;  %v242_v11 = vld [vmem:[%s334_s3 + $0x20] sm:$0xff]  }
   0x3   :  { %24 = vadd.xlane.f32.xlu0 %v23_v2  ;;  %218 = vmatpush3.bf16.xpose.msra.mxu0 %v148_v6  ;;  %v145_v8 = vsel %vm22_vm0, %v240_v7, 0  ;;  %v142_v10 = vsel %vm22_vm0, %v241_v9, 0  ;;  %v139_v12 = vsel %vm22_vm0, %v242_v11, 0  ;;  %v243_v13 = vld [vmem:[%s334_s3 + $0x18] sm:$0xff]   ;;  %v244_v25 = vld [vmem:[%s334_s3 + $0x10] sm:$0xff]   ;;  %v245_v27 = vld [vmem:[%s334_s3 + $0x8] sm:$0xff]  }
   0x4   :  { %219 = vmatprep.subr.bf16.mxu0 %v251_v4  ;;  %v136_v14 = vsel %vm22_vm0, %v243_v13, 0  ;;  %v133_v26 = vsel %vm22_vm0, %v244_v25, 0  ;;  %v130_v28 = vsel %vm22_vm0, %v245_v27, 0  ;;  %v246_v29 = vld [vmem:[%s334_s3] sm:$0xff]  }
   0x5   :  { %v127_v30 = vsel %vm22_vm0, %v246_v29, 0  ;;  %v197_v39 = vld [vmem:[%s335_s1] ss:$0 sm:$0xff] }
   0x6   :  { %v198_v43 = vld [vmem:[%s336_s2] ss:$0 sm:$0xff] }
   0x7   :  { %27 = vadd.xlane.f32.xlu0 %v26_v3 }
   0xb   :  { %220 = vmatpush3.bf16.xpose.msra.mxu0 %v145_v8 }
   0xc   :  { %221 = vmatprep.subr.bf16.mxu0 %v251_v4 }
  0x13   :  { %222 = vmatpush3.bf16.xpose.msra.mxu0 %v142_v10 }
  0x14   :  { %223 = vmatprep.subr.bf16.mxu0 %v251_v4 }
  0x1b   :  { %224 = vmatpush3.bf16.xpose.msra.mxu0 %v139_v12 }
  0x1c   :  { %225 = vmatprep.subr.bf16.mxu0 %v251_v4 }
  0x23   :  { %226 = vmatpush3.bf16.xpose.msra.mxu0 %v136_v14 }
  0x24   :  { %227 = vmatprep.subr.bf16.mxu0 %v251_v4 }
  0x2b   :  { %228 = vmatpush3.bf16.xpose.msra.mxu0 %v133_v26 }
  0x2c   :  { %229 = vmatprep.subr.bf16.mxu0 %v251_v4 }
  0x33   :  { %230 = vmatpush3.bf16.xpose.msra.mxu0 %v130_v28 }
  0x34   :  { %231 = vmatprep.subr.bf16.mxu0 %v251_v4 }
  0x3b   :  { %232 = vmatpush3.bf16.xpose.msra.mxu0 %v127_v30 }
  0x8c   :  { %v25_v15 = vpop.xlane.xlu0 %24 }
  0x8d   :  { %v30_v16 = vmul.f32 0.015625, %v25_v15 }
  0x8f   :  { %v32_v17 = vsub.f32 %v18_v0, %v30_v16 }
  0x90   :  { %v28_v18 = vpop.xlane.xlu0 %27 }
  0x91   :  { %v31_v19 = vmul.f32 0.015625, %v28_v18  ;;  %v34_v20 = vmul.f32 %v32_v17, %v32_v17 }
  0x93   :  { %v33_v21 = vsub.f32 %v19_v1, %v31_v19  ;;  %v36_v22 = vsel %vm22_vm0, %v34_v20, 0.0 }
  0x94   :  { %37 = vadd.xlane.f32.xlu1 %v36_v22 }
  0x95   :  { %v35_v23 = vmul.f32 %v33_v21, %v33_v21 }
  0x97   :  { %v39_v24 = vsel %vm22_vm0, %v35_v23, 0.0 }
  0x98   :  { %40 = vadd.xlane.f32.xlu1 %v39_v24 }
 0x11d   :  { %v38_v31 = vpop.xlane.xlu1 %37 }
 0x11e   :  { %v42_v32 = vmul.f32 0.015625, %v38_v31 }
 0x120   :  { %v44_v33 = vadd.f32 1e-05, %v42_v32 }
 0x121   :  { %v41_v34 = vpop.xlane.xlu1 %40 }
 0x122   :  { %247 = vrsqrt.f32 %v44_v33  ;;  %v43_v35 = vmul.f32 0.015625, %v41_v34 }
 0x124   :  { %v45_v36 = vadd.f32 1e-05, %v43_v35 }
 0x126   :  { %249 = vrsqrt.f32 %v45_v36 }
 0x12f   :  { %v248_v37 = vpop.eup %247 }
 0x130   :  { %v48_v38 = vmul.f32 %v248_v37, %v32_v17 }
 0x132   :  { %v56_v42 = vmul.f32 %v197_v39, %v48_v38 }
 0x133   :  { %v250_v40 = vpop.eup %249 }
 0x134   :  { %v49_v41 = vmul.f32 %v250_v40, %v33_v21  ;;  %v64_v45 = vadd.f32 %v198_v43, %v56_v42 }
 0x136   :  { %v57_v44 = vmul.f32 %v197_v39, %v49_v41 }
 0x138   :  { %v65_v46 = vadd.f32 %v198_v43, %v57_v44 }
 0x13a   :  { %v66_v47 = vpack.c.bf16 %v65_v46, %v64_v45 }
 0x13c   :  { %234 = vmatmul.mubr.msk.bf16.vlgmr.msra.gmra.mxu0 %vm22_vm0, %v66_v47 }
 0x1fc   :  { %v184_v48 = vpop.f32.mrf.mxu0 }
 0x1fd   :  { %191 = vst [vmem:[%s337_s4] sm:$0xff] %v184_v48 }
 0x1fe   :  { %v235_v49 = vpop.f32.mrf.mxu0 }
 0x200   :  { %v187_v50 = vpop.f32.mrf.mxu0 }
 0x201   :  { %192 = vst [vmem:[%s337_s4 + $0x8] sm:$0xff] %v187_v50 }
 0x202   :  { %v236_v51 = vpop.f32.mrf.mxu0 }

</bundles_post_ra>
